<compile_context>
chip_gen: v5e
topology: v5e:2x2
jax: 0.10.0
libtpu: 0.0.40
codegen_flags: <defaults>
</compile_context>

<pallas_src>
import functools

import jax
import jax.numpy as jnp
from jax.experimental import pallas as pl
from jax.experimental.pallas import tpu as pltpu

GIN_EPS = 0.0      # GINConv eps (default 0.0, train_eps=False)
BN_EPS = 1e-5      # BatchNorm1d eps

_LANE = 128        # lane width; node axis and feature axes padded to this


def _round_up(v, m):
    return ((v + m - 1) // m) * m


# ----------------------------------------------------------------------------
# Fused forward kernel: all GIN layers + head in ONE pallas_call.
# ----------------------------------------------------------------------------
def login_fused_kernel(adj_ref, x_ref,
                       w1a_ref, ga_ref, ba_ref, w2a_ref, b2a_ref,
                       w1s_ref, gs_ref, bs_ref, w2s_ref, b2s_ref,
                       wl1_ref, bl1_ref, wl2_ref, bl2_ref,
                       o_ref,
                       *, n_valid, n_class, n_stacked, log_softmax):
    adj = adj_ref[...]                                       # (Np, Np) bf16

    row_ids = jax.lax.broadcasted_iota(jnp.int32, (adj.shape[0], 1), 0)
    row_mask = (row_ids < n_valid).astype(jnp.float32)       # padded-row mask
    inv_n = 1.0 / float(n_valid)

    def gin_layer(x_b, w1, gamma, beta, w2, b2):
        # Invariant: padded rows of x_b are exactly 0, and padded rows/cols of
        # adj are 0, so (with no Linear-1 bias) padded rows of h stay 0 and BN
        # batch statistics over all Np rows equal stats over the n_valid rows.
        aggr = jnp.dot(adj, x_b, preferred_element_type=jnp.float32)
        h = x_b.astype(jnp.float32) * (1.0 + GIN_EPS) + aggr
        # Linear 1 -- bias dropped: BatchNorm (batch stats) subtracts the
        # per-column mean, so a per-column constant bias cancels exactly.
        h = jnp.dot(h.astype(jnp.bfloat16), w1,
                    preferred_element_type=jnp.float32)
        # BatchNorm1d: one-pass stats; affine folded into one scale/shift FMA.
        s = jnp.sum(h, axis=0, keepdims=True)
        ss = jnp.sum(h * h, axis=0, keepdims=True)
        mean = s * inv_n
        var = jnp.maximum(ss * inv_n - mean * mean, 0.0)     # clamp cancellation
        scale = gamma * jax.lax.rsqrt(var + BN_EPS)
        shift = beta - mean * scale
        h = jnp.maximum(h * scale + shift, 0.0)              # BN + ReLU
        # Linear 2 + ReLU
        h = jnp.dot(h.astype(jnp.bfloat16), w2,
                    preferred_element_type=jnp.float32) + b2
        h = jnp.maximum(h, 0.0)
        # Re-zero padded rows so the next layer's BN stats stay exact.
        return (h * row_mask).astype(jnp.bfloat16)

    # layer 1 (input dim may differ from hidden dim)
    x_b = gin_layer(x_ref[...], w1a_ref[...], ga_ref[...], ba_ref[...],
                    w2a_ref[...], b2a_ref[...])

    # layers 2..L: stacked (n_hidden, n_hidden) weights
    if n_stacked > 0:
        if n_stacked <= 4:
            for i in range(n_stacked):                       # static unroll
                x_b = gin_layer(x_b, w1s_ref[i], gs_ref[i], bs_ref[i],
                                w2s_ref[i], b2s_ref[i])
        else:
            # deep stacks: fori_loop bounds live ranges to one layer's temps
            def body(i, xb):
                return gin_layer(xb, w1s_ref[i], gs_ref[i], bs_ref[i],
                                 w2s_ref[i], b2s_ref[i])
            x_b = jax.lax.fori_loop(0, n_stacked, body, x_b)

    # head: lin1 -> relu -> lin2 -> optional log-softmax over classes (dim=1)
    h = jnp.dot(x_b, wl1_ref[...],
                preferred_element_type=jnp.float32) + bl1_ref[...]
    h = jnp.maximum(h, 0.0)
    logits = jnp.dot(h.astype(jnp.bfloat16), wl2_ref[...],
                     preferred_element_type=jnp.float32) + bl2_ref[...]
    if log_softmax:
        col_ids = jax.lax.broadcasted_iota(jnp.int32, logits.shape, 1)
        valid = col_ids < n_class                    # mask padded class lanes
        masked = jnp.where(valid, logits, -1e30)
        m = jnp.max(masked, axis=1, keepdims=True)
        z = masked - m
        e = jnp.where(valid, jnp.exp(z), 0.0)
        lse = jnp.log(jnp.sum(e, axis=1, keepdims=True))
        o_ref[...] = z - lse                         # == log(softmax(logits))
    else:
        o_ref[...] = logits


# ----------------------------------------------------------------------------
# Parameter construction (deterministic, PyTorch-like init)
# ----------------------------------------------------------------------------
def _linear_params(key, fan_in, fan_out):
    kw, kb = jax.random.split(key)
    bound = 1.0 / float(fan_in) ** 0.5
    w = jax.random.uniform(kw, (fan_in, fan_out), jnp.float32, -bound, bound)
    b = jax.random.uniform(kb, (fan_out,), jnp.float32, -bound, bound)
    return w, b


def build_login_params(key, n_feat, n_hidden, n_emb, n_class, n_layers):
    params = {"convs": []}
    dims_in = [n_feat] + [n_hidden] * (n_layers - 1)
    for d_in in dims_in:
        key, k1, k2 = jax.random.split(key, 3)
        w1, b1 = _linear_params(k1, d_in, n_hidden)
        w2, b2 = _linear_params(k2, n_hidden, n_hidden)
        gamma = jnp.ones((n_hidden,), jnp.float32)    # BatchNorm1d weight
        beta = jnp.zeros((n_hidden,), jnp.float32)    # BatchNorm1d bias
        params["convs"].append((w1, b1, gamma, beta, w2, b2))
    key, k1, k2 = jax.random.split(key, 3)
    params["lin1"] = _linear_params(k1, n_hidden, n_emb)
    params["lin2"] = _linear_params(k2, n_emb, n_class)
    return params


# ----------------------------------------------------------------------------
# One-time padding / packing of parameters for the fused kernel
# ----------------------------------------------------------------------------
def _pad2d(a, rows, cols, dtype):
    out = jnp.zeros((rows, cols), dtype)
    return out.at[: a.shape[0], : a.shape[1]].set(a.astype(dtype))


def _pad_row(v, cols, dtype):
    out = jnp.zeros((1, cols), dtype)
    return out.at[0, : v.shape[0]].set(v.astype(dtype))


def prepare_login_params(params, n_feat, n_hidden, n_emb, n_class):
    # Pads stay at the 128-lane floor: padding further (e.g. to 256) would
    # only add zero-lane FLOPs to the dominant A@x matmul.
    Fp = _round_up(n_feat, _LANE)
    Hp = _round_up(n_hidden, _LANE)
    Ep = _round_up(n_emb, _LANE)
    Cp = _round_up(n_class, _LANE)

    convs = params["convs"]
    w1, _b1, g, bt, w2, b2 = convs[0]       # Linear-1 bias intentionally unused
    first = dict(
        w1=_pad2d(w1, Fp, Hp, jnp.bfloat16),
        gamma=_pad_row(g, Hp, jnp.float32),
        beta=_pad_row(bt, Hp, jnp.float32),
        w2=_pad2d(w2, Hp, Hp, jnp.bfloat16),
        b2=_pad_row(b2, Hp, jnp.float32),
    )
    rest = convs[1:]
    n_stacked = len(rest)
    if n_stacked == 0:
        # dummy stack (never read; static layer count is 0)
        stk = dict(
            w1=jnp.zeros((1, Hp, Hp), jnp.bfloat16),
            gamma=jnp.zeros((1, 1, Hp), jnp.float32),
            beta=jnp.zeros((1, 1, Hp), jnp.float32),
            w2=jnp.zeros((1, Hp, Hp), jnp.bfloat16),
            b2=jnp.zeros((1, 1, Hp), jnp.float32),
        )
    else:
        stk = dict(
            w1=jnp.stack([_pad2d(c[0], Hp, Hp, jnp.bfloat16) for c in rest]),
            gamma=jnp.stack([_pad_row(c[2], Hp, jnp.float32) for c in rest]),
            beta=jnp.stack([_pad_row(c[3], Hp, jnp.float32) for c in rest]),
            w2=jnp.stack([_pad2d(c[4], Hp, Hp, jnp.bfloat16) for c in rest]),
            b2=jnp.stack([_pad_row(c[5], Hp, jnp.float32) for c in rest]),
        )
    wl1, bl1 = params["lin1"]
    wl2, bl2 = params["lin2"]
    head = dict(
        w1=_pad2d(wl1, Hp, Ep, jnp.bfloat16),
        b1=_pad_row(bl1, Ep, jnp.float32),
        w2=_pad2d(wl2, Ep, Cp, jnp.bfloat16),
        b2=_pad_row(bl2, Cp, jnp.float32),
    )
    meta = dict(n_stacked=n_stacked,
                dims=(n_feat, n_hidden, n_emb, n_class))
    return dict(first=first, stacked=stk, head=head, meta=meta)


# ----------------------------------------------------------------------------
# Adjacency: built + padded + cast ONCE, reused every forward call
# ----------------------------------------------------------------------------
def build_dense_adjacency(edge_index, n_nodes):
    """A[dst, src] += 1 -- PyG GINConv sum aggregation, multigraph semantics,
    no self-loops.  Returns the lane-dense (Np, Np) bf16 padded adjacency
    (Np a multiple of 128) so no per-call O(N^2) pad/cast traffic remains."""
    src, dst = edge_index[0], edge_index[1]
    adj = jnp.zeros((n_nodes, n_nodes), jnp.float32).at[dst, src].add(1.0)
    # bf16 represents integers exactly up to 256
    assert float(jnp.max(adj)) <= 256.0, (
        "edge multiplicity > 256: bf16 adjacency would be inexact")
    n_pad = _round_up(max(n_nodes, _LANE), _LANE)
    adj_p = jnp.zeros((n_pad, n_pad), jnp.bfloat16)
    adj_p = adj_p.at[:n_nodes, :n_nodes].set(adj.astype(jnp.bfloat16))
    return adj_p


# ----------------------------------------------------------------------------
# Forward wrapper: one fused, jitted pallas_call
# ----------------------------------------------------------------------------
def _vmem_capacity_bytes():
    try:
        return int(pltpu.get_tpu_info().vmem_capacity_bytes)
    except Exception:
        return 64 * 1024 * 1024    # conservative fallback (v7x per-TC VMEM)


@functools.partial(jax.jit, static_argnames=("n_class", "n_stacked", "softmax"))
def _login_forward_impl(x, adj_p, flat_params, *, n_class, n_stacked, softmax):
    n, f = x.shape
    n_pad = adj_p.shape[0]
    (w1a, ga, ba, w2a, b2a,
     w1s, gs, bs, w2s, b2s,
     wl1, bl1, wl2, bl2) = flat_params
    f_pad, h_pad = w1a.shape
    e_pad = wl1.shape[1]
    c_pad = wl2.shape[1]

    # lane-dense, zero-padded bf16 node features (tiny vs the N^2 adjacency)
    x_p = jnp.zeros((n_pad, f_pad), jnp.bfloat16)
    x_p = x_p.at[:n, :f].set(x.astype(jnp.bfloat16))

    operands = (adj_p, x_p, w1a, ga, ba, w2a, b2a,
                w1s, gs, bs, w2s, b2s, wl1, bl1, wl2, bl2)

    # Per-generation VMEM budget: operands + output + live f32 activation
    # temps of the fused layer chain, plus headroom for compiler scratch.
    operand_bytes = sum(int(op.size) * op.dtype.itemsize for op in operands)
    out_bytes = n_pad * c_pad * 4
    act_bytes = 6 * n_pad * max(f_pad, h_pad, e_pad, c_pad) * 4
    footprint = operand_bytes + out_bytes + act_bytes
    vmem_cap = _vmem_capacity_bytes()          # 128 MiB v5e/v6e, 64 MiB v7x
    budget = int(vmem_cap * 0.80)
    assert footprint <= budget, (
        f"fused single-block LoGIN needs ~{footprint >> 20} MiB VMEM but the "
        f"budget on this chip is {budget >> 20} MiB; use a row-tiled variant")
    # TODO(synk): row-tiled pipelined grid (stream A row-tiles, two-pass BN,
    #             dimension_semantics=("parallel",)) for larger graphs and to
    #             use both v7x TensorCores.
    vmem_limit = max(16 * 1024 * 1024,
                     min(int(footprint * 1.25) + (4 << 20),
                         int(vmem_cap * 0.85)))

    kern = functools.partial(login_fused_kernel, n_valid=n, n_class=n_class,
                             n_stacked=n_stacked, log_softmax=softmax)
    vmem = pl.BlockSpec(memory_space=pltpu.MemorySpace.VMEM)
    out = pl.pallas_call(
        kern,
        out_shape=jax.ShapeDtypeStruct((n_pad, c_pad), jnp.float32),
        in_specs=[vmem] * len(operands),
        out_specs=vmem,
        compiler_params=pltpu.CompilerParams(vmem_limit_bytes=vmem_limit),
    )(*operands)
    return out[:n, :n_class]


def login_forward(x, adj_p, prepped, *, softmax=True):
    """x: (N, n_feat) float32; adj_p: padded (Np, Np) bf16 adjacency from
    build_dense_adjacency (built once, reused every call)."""
    first, stk, head, meta = (prepped["first"], prepped["stacked"],
                              prepped["head"], prepped["meta"])
    flat = (first["w1"], first["gamma"], first["beta"], first["w2"], first["b2"],
            stk["w1"], stk["gamma"], stk["beta"], stk["w2"], stk["b2"],
            head["w1"], head["b1"], head["w2"], head["b2"])
    return _login_forward_impl(x, adj_p, flat,
                               n_class=meta["dims"][3],
                               n_stacked=meta["n_stacked"],
                               softmax=softmax)


# ----------------------------------------------------------------------------
# Demo
# ----------------------------------------------------------------------------
if __name__ == "__main__":
    # params: in_channels=16, hidden_dim=32, emb_dim=16, out_channels=4,
    #         n_layers=2, task='node', softmax=True
    N_NODES, N_FEAT, N_HIDDEN, N_EMB, N_CLASS, N_LAYERS = 8, 16, 32, 16, 4, 2

    key = jax.random.PRNGKey(0)
    key, kx, ke, kp = jax.random.split(key, 4)

    x = jax.random.normal(kx, (N_NODES, N_FEAT), jnp.float32)
    n_edges = 16
    edge_index = jax.random.randint(ke, (2, n_edges), 0, N_NODES, jnp.int32)

    raw_params = build_login_params(kp, N_FEAT, N_HIDDEN, N_EMB, N_CLASS,
                                    N_LAYERS)
    prepped = prepare_login_params(raw_params, N_FEAT, N_HIDDEN, N_EMB, N_CLASS)
    adj_p = build_dense_adjacency(edge_index, N_NODES)   # built once, reused

    out = login_forward(x, adj_p, prepped, softmax=True)
    out = jax.block_until_ready(out)

    assert out.shape == (N_NODES, N_CLASS)
    assert bool(jnp.all(jnp.isfinite(out)))
    # each row of log-softmax must exponentiate to ~1
    assert bool(jnp.allclose(jnp.sum(jnp.exp(out), axis=1), 1.0, atol=1e-3))
    print("KERNEL_OK")
</pallas_src>

<mosaic_0001>
module attributes {stable_mosaic.version = 11 : i64} {
  func.func @login_fused_kernel(%arg0: memref<128x128xbf16, #tpu.memory_space<vmem>>, %arg1: memref<128x128xbf16, #tpu.memory_space<vmem>>, %arg2: memref<128x128xbf16, #tpu.memory_space<vmem>>, %arg3: memref<1x128xf32, #tpu.memory_space<vmem>>, %arg4: memref<1x128xf32, #tpu.memory_space<vmem>>, %arg5: memref<128x128xbf16, #tpu.memory_space<vmem>>, %arg6: memref<1x128xf32, #tpu.memory_space<vmem>>, %arg7: memref<1x128x128xbf16, #tpu.memory_space<vmem>>, %arg8: memref<1x1x128xf32, #tpu.memory_space<vmem>>, %arg9: memref<1x1x128xf32, #tpu.memory_space<vmem>>, %arg10: memref<1x128x128xbf16, #tpu.memory_space<vmem>>, %arg11: memref<1x1x128xf32, #tpu.memory_space<vmem>>, %arg12: memref<128x128xbf16, #tpu.memory_space<vmem>>, %arg13: memref<1x128xf32, #tpu.memory_space<vmem>>, %arg14: memref<128x128xbf16, #tpu.memory_space<vmem>>, %arg15: memref<1x128xf32, #tpu.memory_space<vmem>>, %arg16: memref<128x128xf32, #tpu.memory_space<vmem>>) attributes {dimension_semantics = [], scalar_prefetch = 0 : i64, scratch_operands = 0 : i64, tpu.core_type = #tpu.core_type<tc>} {
    %c0 = arith.constant 0 : index
    %c0_0 = arith.constant 0 : index
    %0 = vector.load %arg0[%c0, %c0_0] : memref<128x128xbf16, #tpu.memory_space<vmem>>, vector<128x128xbf16>
    %1 = tpu.iota {dimensions = array<i32: 0>} : vector<128x1xi32>
    %c8_i32 = arith.constant 8 : i32
    %2 = vector.broadcast %c8_i32 : i32 to vector<128x1xi32>
    %3 = arith.cmpi slt, %1, %2 : vector<128x1xi32>
    %4 = arith.extui %3 : vector<128x1xi1> to vector<128x1xi32>
    %5 = arith.sitofp %4 : vector<128x1xi32> to vector<128x1xf32>
    %c0_1 = arith.constant 0 : index
    %c0_2 = arith.constant 0 : index
    %6 = vector.load %arg1[%c0_1, %c0_2] : memref<128x128xbf16, #tpu.memory_space<vmem>>, vector<128x128xbf16>
    %c0_3 = arith.constant 0 : index
    %c0_4 = arith.constant 0 : index
    %7 = vector.load %arg2[%c0_3, %c0_4] : memref<128x128xbf16, #tpu.memory_space<vmem>>, vector<128x128xbf16>
    %c0_5 = arith.constant 0 : index
    %c0_6 = arith.constant 0 : index
    %8 = vector.load %arg3[%c0_5, %c0_6] : memref<1x128xf32, #tpu.memory_space<vmem>>, vector<1x128xf32>
    %c0_7 = arith.constant 0 : index
    %c0_8 = arith.constant 0 : index
    %9 = vector.load %arg4[%c0_7, %c0_8] : memref<1x128xf32, #tpu.memory_space<vmem>>, vector<1x128xf32>
    %c0_9 = arith.constant 0 : index
    %c0_10 = arith.constant 0 : index
    %10 = vector.load %arg5[%c0_9, %c0_10] : memref<128x128xbf16, #tpu.memory_space<vmem>>, vector<128x128xbf16>
    %c0_11 = arith.constant 0 : index
    %c0_12 = arith.constant 0 : index
    %11 = vector.load %arg6[%c0_11, %c0_12] : memref<1x128xf32, #tpu.memory_space<vmem>>, vector<1x128xf32>
    %cst = arith.constant dense<0.000000e+00> : vector<128x128xf32>
    %12 = tpu.matmul %0, %6, %cst {dimension_numbers = #tpu.dot_dimension_numbers<[1], [0], [0], [1], [0, 0, 1, 1], [], []>} : vector<128x128xbf16>, vector<128x128xbf16>, vector<128x128xf32> -> vector<128x128xf32>
    %13 = arith.extf %6 : vector<128x128xbf16> to vector<128x128xf32>
    %cst_13 = arith.constant 1.000000e+00 : f32
    %14 = vector.broadcast %cst_13 : f32 to vector<128x128xf32>
    %15 = arith.mulf %13, %14 : vector<128x128xf32>
    %16 = arith.addf %15, %12 : vector<128x128xf32>
    %17 = arith.truncf %16 : vector<128x128xf32> to vector<128x128xbf16>
    %cst_14 = arith.constant dense<0.000000e+00> : vector<128x128xf32>
    %18 = tpu.matmul %17, %7, %cst_14 {dimension_numbers = #tpu.dot_dimension_numbers<[1], [0], [0], [1], [0, 0, 1, 1], [], []>} : vector<128x128xbf16>, vector<128x128xbf16>, vector<128x128xf32> -> vector<128x128xf32>
    %cst_15 = arith.constant dense<0.000000e+00> : vector<128xf32>
    %19 = vector.multi_reduction <add>, %18, %cst_15 [0] : vector<128x128xf32> to vector<128xf32>
    %20 = vector.shape_cast %19 : vector<128xf32> to vector<1x128xf32>
    %21 = arith.mulf %18, %18 : vector<128x128xf32>
    %cst_16 = arith.constant dense<0.000000e+00> : vector<128xf32>
    %22 = vector.multi_reduction <add>, %21, %cst_16 [0] : vector<128x128xf32> to vector<128xf32>
    %23 = vector.shape_cast %22 : vector<128xf32> to vector<1x128xf32>
    %cst_17 = arith.constant 1.250000e-01 : f32
    %24 = vector.broadcast %cst_17 : f32 to vector<1x128xf32>
    %25 = arith.mulf %20, %24 : vector<1x128xf32>
    %cst_18 = arith.constant 1.250000e-01 : f32
    %26 = vector.broadcast %cst_18 : f32 to vector<1x128xf32>
    %27 = arith.mulf %23, %26 : vector<1x128xf32>
    %28 = arith.mulf %25, %25 : vector<1x128xf32>
    %29 = arith.subf %27, %28 : vector<1x128xf32>
    %cst_19 = arith.constant 0.000000e+00 : f32
    %30 = vector.broadcast %cst_19 : f32 to vector<1x128xf32>
    %31 = arith.maximumf %29, %30 : vector<1x128xf32>
    %cst_20 = arith.constant 9.99999974E-6 : f32
    %32 = vector.broadcast %cst_20 : f32 to vector<1x128xf32>
    %33 = arith.addf %31, %32 : vector<1x128xf32>
    %34 = math.rsqrt %33 : vector<1x128xf32>
    %35 = arith.mulf %8, %34 : vector<1x128xf32>
    %36 = arith.mulf %25, %35 : vector<1x128xf32>
    %37 = arith.subf %9, %36 : vector<1x128xf32>
    %38 = vector.broadcast %35 : vector<1x128xf32> to vector<128x128xf32>
    %39 = arith.mulf %18, %38 : vector<128x128xf32>
    %40 = vector.broadcast %37 : vector<1x128xf32> to vector<128x128xf32>
    %41 = arith.addf %39, %40 : vector<128x128xf32>
    %cst_21 = arith.constant 0.000000e+00 : f32
    %42 = vector.broadcast %cst_21 : f32 to vector<128x128xf32>
    %43 = arith.maximumf %41, %42 : vector<128x128xf32>
    %44 = arith.truncf %43 : vector<128x128xf32> to vector<128x128xbf16>
    %cst_22 = arith.constant dense<0.000000e+00> : vector<128x128xf32>
    %45 = tpu.matmul %44, %10, %cst_22 {dimension_numbers = #tpu.dot_dimension_numbers<[1], [0], [0], [1], [0, 0, 1, 1], [], []>} : vector<128x128xbf16>, vector<128x128xbf16>, vector<128x128xf32> -> vector<128x128xf32>
    %46 = vector.broadcast %11 : vector<1x128xf32> to vector<128x128xf32>
    %47 = arith.addf %45, %46 : vector<128x128xf32>
    %cst_23 = arith.constant 0.000000e+00 : f32
    %48 = vector.broadcast %cst_23 : f32 to vector<128x128xf32>
    %49 = arith.maximumf %47, %48 : vector<128x128xf32>
    %50 = vector.broadcast %5 : vector<128x1xf32> to vector<128x128xf32>
    %51 = arith.mulf %49, %50 : vector<128x128xf32>
    %52 = arith.truncf %51 : vector<128x128xf32> to vector<128x128xbf16>
    %c0_24 = arith.constant 0 : index
    %c0_25 = arith.constant 0 : index
    %c0_26 = arith.constant 0 : index
    %53 = vector.load %arg7[%c0_24, %c0_25, %c0_26] : memref<1x128x128xbf16, #tpu.memory_space<vmem>>, vector<1x128x128xbf16>
    %54 = vector.shape_cast %53 : vector<1x128x128xbf16> to vector<128x128xbf16>
    %c0_27 = arith.constant 0 : index
    %c0_28 = arith.constant 0 : index
    %c0_29 = arith.constant 0 : index
    %55 = vector.load %arg8[%c0_27, %c0_28, %c0_29] : memref<1x1x128xf32, #tpu.memory_space<vmem>>, vector<1x1x128xf32>
    %56 = vector.shape_cast %55 : vector<1x1x128xf32> to vector<1x128xf32>
    %c0_30 = arith.constant 0 : index
    %c0_31 = arith.constant 0 : index
    %c0_32 = arith.constant 0 : index
    %57 = vector.load %arg9[%c0_30, %c0_31, %c0_32] : memref<1x1x128xf32, #tpu.memory_space<vmem>>, vector<1x1x128xf32>
    %58 = vector.shape_cast %57 : vector<1x1x128xf32> to vector<1x128xf32>
    %c0_33 = arith.constant 0 : index
    %c0_34 = arith.constant 0 : index
    %c0_35 = arith.constant 0 : index
    %59 = vector.load %arg10[%c0_33, %c0_34, %c0_35] : memref<1x128x128xbf16, #tpu.memory_space<vmem>>, vector<1x128x128xbf16>
    %60 = vector.shape_cast %59 : vector<1x128x128xbf16> to vector<128x128xbf16>
    %c0_36 = arith.constant 0 : index
    %c0_37 = arith.constant 0 : index
    %c0_38 = arith.constant 0 : index
    %61 = vector.load %arg11[%c0_36, %c0_37, %c0_38] : memref<1x1x128xf32, #tpu.memory_space<vmem>>, vector<1x1x128xf32>
    %62 = vector.shape_cast %61 : vector<1x1x128xf32> to vector<1x128xf32>
    %cst_39 = arith.constant dense<0.000000e+00> : vector<128x128xf32>
    %63 = tpu.matmul %0, %52, %cst_39 {dimension_numbers = #tpu.dot_dimension_numbers<[1], [0], [0], [1], [0, 0, 1, 1], [], []>} : vector<128x128xbf16>, vector<128x128xbf16>, vector<128x128xf32> -> vector<128x128xf32>
    %64 = arith.extf %52 : vector<128x128xbf16> to vector<128x128xf32>
    %cst_40 = arith.constant 1.000000e+00 : f32
    %65 = vector.broadcast %cst_40 : f32 to vector<128x128xf32>
    %66 = arith.mulf %64, %65 : vector<128x128xf32>
    %67 = arith.addf %66, %63 : vector<128x128xf32>
    %68 = arith.truncf %67 : vector<128x128xf32> to vector<128x128xbf16>
    %cst_41 = arith.constant dense<0.000000e+00> : vector<128x128xf32>
    %69 = tpu.matmul %68, %54, %cst_41 {dimension_numbers = #tpu.dot_dimension_numbers<[1], [0], [0], [1], [0, 0, 1, 1], [], []>} : vector<128x128xbf16>, vector<128x128xbf16>, vector<128x128xf32> -> vector<128x128xf32>
    %cst_42 = arith.constant dense<0.000000e+00> : vector<128xf32>
    %70 = vector.multi_reduction <add>, %69, %cst_42 [0] : vector<128x128xf32> to vector<128xf32>
    %71 = vector.shape_cast %70 : vector<128xf32> to vector<1x128xf32>
    %72 = arith.mulf %69, %69 : vector<128x128xf32>
    %cst_43 = arith.constant dense<0.000000e+00> : vector<128xf32>
    %73 = vector.multi_reduction <add>, %72, %cst_43 [0] : vector<128x128xf32> to vector<128xf32>
    %74 = vector.shape_cast %73 : vector<128xf32> to vector<1x128xf32>
    %cst_44 = arith.constant 1.250000e-01 : f32
    %75 = vector.broadcast %cst_44 : f32 to vector<1x128xf32>
    %76 = arith.mulf %71, %75 : vector<1x128xf32>
    %cst_45 = arith.constant 1.250000e-01 : f32
    %77 = vector.broadcast %cst_45 : f32 to vector<1x128xf32>
    %78 = arith.mulf %74, %77 : vector<1x128xf32>
    %79 = arith.mulf %76, %76 : vector<1x128xf32>
    %80 = arith.subf %78, %79 : vector<1x128xf32>
    %cst_46 = arith.constant 0.000000e+00 : f32
    %81 = vector.broadcast %cst_46 : f32 to vector<1x128xf32>
    %82 = arith.maximumf %80, %81 : vector<1x128xf32>
    %cst_47 = arith.constant 9.99999974E-6 : f32
    %83 = vector.broadcast %cst_47 : f32 to vector<1x128xf32>
    %84 = arith.addf %82, %83 : vector<1x128xf32>
    %85 = math.rsqrt %84 : vector<1x128xf32>
    %86 = arith.mulf %56, %85 : vector<1x128xf32>
    %87 = arith.mulf %76, %86 : vector<1x128xf32>
    %88 = arith.subf %58, %87 : vector<1x128xf32>
    %89 = vector.broadcast %86 : vector<1x128xf32> to vector<128x128xf32>
    %90 = arith.mulf %69, %89 : vector<128x128xf32>
    %91 = vector.broadcast %88 : vector<1x128xf32> to vector<128x128xf32>
    %92 = arith.addf %90, %91 : vector<128x128xf32>
    %cst_48 = arith.constant 0.000000e+00 : f32
    %93 = vector.broadcast %cst_48 : f32 to vector<128x128xf32>
    %94 = arith.maximumf %92, %93 : vector<128x128xf32>
    %95 = arith.truncf %94 : vector<128x128xf32> to vector<128x128xbf16>
    %cst_49 = arith.constant dense<0.000000e+00> : vector<128x128xf32>
    %96 = tpu.matmul %95, %60, %cst_49 {dimension_numbers = #tpu.dot_dimension_numbers<[1], [0], [0], [1], [0, 0, 1, 1], [], []>} : vector<128x128xbf16>, vector<128x128xbf16>, vector<128x128xf32> -> vector<128x128xf32>
    %97 = vector.broadcast %62 : vector<1x128xf32> to vector<128x128xf32>
    %98 = arith.addf %96, %97 : vector<128x128xf32>
    %cst_50 = arith.constant 0.000000e+00 : f32
    %99 = vector.broadcast %cst_50 : f32 to vector<128x128xf32>
    %100 = arith.maximumf %98, %99 : vector<128x128xf32>
    %101 = vector.broadcast %5 : vector<128x1xf32> to vector<128x128xf32>
    %102 = arith.mulf %100, %101 : vector<128x128xf32>
    %103 = arith.truncf %102 : vector<128x128xf32> to vector<128x128xbf16>
    %c0_51 = arith.constant 0 : index
    %c0_52 = arith.constant 0 : index
    %104 = vector.load %arg12[%c0_51, %c0_52] : memref<128x128xbf16, #tpu.memory_space<vmem>>, vector<128x128xbf16>
    %cst_53 = arith.constant dense<0.000000e+00> : vector<128x128xf32>
    %105 = tpu.matmul %103, %104, %cst_53 {dimension_numbers = #tpu.dot_dimension_numbers<[1], [0], [0], [1], [0, 0, 1, 1], [], []>} : vector<128x128xbf16>, vector<128x128xbf16>, vector<128x128xf32> -> vector<128x128xf32>
    %c0_54 = arith.constant 0 : index
    %c0_55 = arith.constant 0 : index
    %106 = vector.load %arg13[%c0_54, %c0_55] : memref<1x128xf32, #tpu.memory_space<vmem>>, vector<1x128xf32>
    %107 = vector.broadcast %106 : vector<1x128xf32> to vector<128x128xf32>
    %108 = arith.addf %105, %107 : vector<128x128xf32>
    %cst_56 = arith.constant 0.000000e+00 : f32
    %109 = vector.broadcast %cst_56 : f32 to vector<128x128xf32>
    %110 = arith.maximumf %108, %109 : vector<128x128xf32>
    %111 = arith.truncf %110 : vector<128x128xf32> to vector<128x128xbf16>
    %c0_57 = arith.constant 0 : index
    %c0_58 = arith.constant 0 : index
    %112 = vector.load %arg14[%c0_57, %c0_58] : memref<128x128xbf16, #tpu.memory_space<vmem>>, vector<128x128xbf16>
    %cst_59 = arith.constant dense<0.000000e+00> : vector<128x128xf32>
    %113 = tpu.matmul %111, %112, %cst_59 {dimension_numbers = #tpu.dot_dimension_numbers<[1], [0], [0], [1], [0, 0, 1, 1], [], []>} : vector<128x128xbf16>, vector<128x128xbf16>, vector<128x128xf32> -> vector<128x128xf32>
    %c0_60 = arith.constant 0 : index
    %c0_61 = arith.constant 0 : index
    %114 = vector.load %arg15[%c0_60, %c0_61] : memref<1x128xf32, #tpu.memory_space<vmem>>, vector<1x128xf32>
    %115 = vector.broadcast %114 : vector<1x128xf32> to vector<128x128xf32>
    %116 = arith.addf %113, %115 : vector<128x128xf32>
    %117 = tpu.iota {dimensions = array<i32: 1>} : vector<128x128xi32>
    %c4_i32 = arith.constant 4 : i32
    %118 = vector.broadcast %c4_i32 : i32 to vector<128x128xi32>
    %119 = arith.cmpi slt, %117, %118 : vector<128x128xi32>
    %cst_62 = arith.constant -1.000000e+30 : f32
    %120 = vector.broadcast %cst_62 : f32 to vector<128x128xf32>
    %121 = arith.select %119, %116, %120 : vector<128x128xi1>, vector<128x128xf32>
    %cst_63 = arith.constant dense<0xFF800000> : vector<128xf32>
    %122 = vector.multi_reduction <maximumf>, %121, %cst_63 [1] : vector<128x128xf32> to vector<128xf32>
    %123 = vector.shape_cast %122 : vector<128xf32> to vector<128x1xf32>
    %124 = vector.broadcast %123 : vector<128x1xf32> to vector<128x128xf32>
    %125 = arith.subf %121, %124 : vector<128x128xf32>
    %126 = math.exp %125 : vector<128x128xf32>
    %cst_64 = arith.constant 0.000000e+00 : f32
    %127 = vector.broadcast %cst_64 : f32 to vector<128x128xf32>
    %128 = arith.select %119, %126, %127 : vector<128x128xi1>, vector<128x128xf32>
    %cst_65 = arith.constant dense<0.000000e+00> : vector<128xf32>
    %129 = vector.multi_reduction <add>, %128, %cst_65 [1] : vector<128x128xf32> to vector<128xf32>
    %130 = vector.shape_cast %129 : vector<128xf32> to vector<128x1xf32>
    %131 = math.log %130 : vector<128x1xf32>
    %132 = vector.broadcast %131 : vector<128x1xf32> to vector<128x128xf32>
    %133 = arith.subf %125, %132 : vector<128x128xf32>
    %c0_66 = arith.constant 0 : index
    %c0_67 = arith.constant 0 : index
    %134 = vector.load %arg16[%c0_66, %c0_67] : memref<128x128xf32, #tpu.memory_space<vmem>>, vector<128x128xf32>
    tpu.vector_store %arg16[%c0_66, %c0_67], %133 {strides = array<i32>} : memref<128x128xf32, #tpu.memory_space<vmem>>, vector<128x128xf32>,
    return
  }
}

</mosaic_0001>

<bundles_post_ra>
// kernel: _login_forward_impl.1
= control target key start
LH: loop header
LB: loop body
LE: loop exit
PB: predicated region body
PF: predicated region fallthrough
CT: control target
= control target key end

     0   :  { %s3218_s0 = inlined_call_operand.vmem [shape: bf16[128,128], index: 0, kind: input, shape index: {}]   ;;  %s3219_s1 = inlined_call_operand.vmem [shape: bf16[128,128], index: 1, kind: input, shape index: {}]   ;;  %s3220_s2 = inlined_call_operand.hbm [shape: bf16[128,128], index: 2, kind: input, shape index: {}]   ;;  %s3221_s3 = inlined_call_operand.vmem [shape: f32[1,128], index: 3, kind: input, shape index: {}]   ;;  %s3222_s4 = inlined_call_operand.vmem [shape: f32[1,128], index: 4, kind: input, shape index: {}]   ;;  %s3223_s5 = inlined_call_operand.hbm [shape: bf16[128,128], index: 5, kind: input, shape index: {}]   ;;  %s3224_s6 = inlined_call_operand.vmem [shape: f32[1,128], index: 6, kind: input, shape index: {}]   ;;  %s3225_s7 = inlined_call_operand.hbm [shape: bf16[1,128,128], index: 7, kind: input, shape index: {}]   ;;  %s3226_s8 = inlined_call_operand.vmem [shape: f32[1,1,128], index: 8, kind: input, shape index: {}]   ;;  %s3227_s9 = inlined_call_operand.vmem [shape: f32[1,1,128], index: 9, kind: input, shape index: {}]   ;;  %s3228_s10 = inlined_call_operand.hbm [shape: bf16[1,128,128], index: 10, kind: input, shape index: {}]   ;;  %s3229_s11 = inlined_call_operand.vmem [shape: f32[1,1,128], index: 11, kind: input, shape index: {}]   ;;  %s3230_s12 = inlined_call_operand.hbm [shape: bf16[128,128], index: 12, kind: input, shape index: {}]   ;;  %s3231_s13 = inlined_call_operand.vmem [shape: f32[1,128], index: 13, kind: input, shape index: {}]   ;;  %s3232_s14 = inlined_call_operand.hbm [shape: bf16[128,128], index: 14, kind: input, shape index: {}]   ;;  %s3233_s15 = inlined_call_operand.vmem [shape: f32[1,128], index: 15, kind: input, shape index: {}]   ;;  %s3234_s16 = inlined_call_operand.vmem [shape: f32[128,128], index: 16, kind: output, shape index: {}]  }
   0x1   :  { %3236 = sst [smem:[#allocation16_spill]] %s3218_s0 }
   0x2   :  { %21 = vsyncpa [#allocation3], 0 }
   0x3   :  { %22 = vsyncpa [#allocation5], 0 }
   0x4   :  { %23 = vsyncpa [#allocation8], 0 }
   0x5   :  { %24 = vsyncpa [#allocation11], 0  ;;  %s50_s23 = sshll.u32 %s3223_s5, 4  ;;  %s2425_s24 = smov [#allocation4]   ;;  %s51_s23 = int_to_ptr.hbm [resolvable:$true] %s50_s23 }
   0x6   :  { %s52_s25 = sshll.u32 %s2425_s24, 4  ;;  %s82_s28 = sshll.u32 %s3228_s10, 4  ;;  %s53_s25 = int_to_ptr.vmem [resolvable:$true] %s52_s25  ;;  %s83_s28 = int_to_ptr.hbm [resolvable:$true] %s82_s28 }
   0x7   :  { %s2426_s29 = smov 64   ;;  %s2427_s30 = smov 4  }
   0x8   :  { %58 = dma.hbm_to_vmem [thread:$0]  %s51_s23, 1024, %s53_s25, [#allocation5], %s2426_s29, %s2426_s29, %s2427_s30  }
   0x9   :  { %s2428_s0 = smov [#allocation7]   ;;  %s33_s5 = sshll.u32 %s3220_s2, 4  ;;  %s34_s5 = int_to_ptr.hbm [resolvable:$true] %s33_s5 }
   0xa   :  { %s84_s17 = sshll.u32 %s2428_s0, 4  ;;  %s65_s21 = sshll.u32 %s3225_s7, 4  ;;  %s85_s17 = int_to_ptr.vmem [resolvable:$true] %s84_s17  ;;  %s66_s21 = int_to_ptr.hbm [resolvable:$true] %s65_s21 }
   0xb   :  { %90 = dma.hbm_to_vmem [thread:$0]  %s83_s28, 1024, %s85_s17, [#allocation8], %s2426_s29, %s2426_s29, %s2427_s30  }
   0xc   :  { %s2429_s22 = smov [#allocation2]   ;;  %s2430_s23 = smov [#allocation6]  }
   0xd   :  { %s35_s24 = sshll.u32 %s2429_s22, 4  ;;  %s67_s2 = sshll.u32 %s2430_s23, 4  ;;  %s36_s24 = int_to_ptr.vmem [resolvable:$true] %s35_s24  ;;  %s68_s2 = int_to_ptr.vmem [resolvable:$true] %s67_s2 }
   0xe   :  { %41 = dma.hbm_to_vmem [thread:$0]  %s34_s5, 1024, %s36_s24, [#allocation3], %s2426_s29, %s2426_s29, %s2427_s30  }
   0xf   :  { %s97_s27 = sshll.u32 %s3230_s12, 4  ;;  %s112_s0 = sshll.u32 %s3232_s14, 4  ;;  %s98_s27 = int_to_ptr.hbm [resolvable:$true] %s97_s27  ;;  %s113_s0 = int_to_ptr.hbm [resolvable:$true] %s112_s0 }
  0x10   :  { %73 = dma.hbm_to_vmem [thread:$0]  %s66_s21, 1024, %s68_s2, [#allocation5], %s2426_s29, %s2426_s29, %s2427_s30  }
  0x11   :  { %s2431_s17 = smov [#allocation9]   ;;  %s2432_s19 = smov [#allocation10]  }
  0x12   :  { %s99_s18 = sshll.u32 %s2431_s17, 4  ;;  %s114_s12 = sshll.u32 %s2432_s19, 4  ;;  %s100_s18 = int_to_ptr.vmem [resolvable:$true] %s99_s18  ;;  %s115_s12 = int_to_ptr.vmem [resolvable:$true] %s114_s12 }
  0x13   :  { %105 = dma.hbm_to_vmem [thread:$0]  %s98_s27, 1024, %s100_s18, [#allocation8], %s2426_s29, %s2426_s29, %s2427_s30  }
  0x14   :  { %120 = dma.hbm_to_vmem [thread:$0]  %s113_s0, 1024, %s115_s12, [#allocation11], %s2426_s29, %s2426_s29, %s2427_s30  }
  0x15   :  { %2417 = dma.done.wait [#allocation3], 1024  }
  0x16   :  { %2418 = vsyncadd [#allocation3], 4294966272 }
  0x17   :  { %2419 = dma.done.wait [#allocation5], 2048  }
  0x18   :  { %2420 = vsyncadd [#allocation5], 4294965248 }
  0x19   :  { %2421 = dma.done.wait [#allocation8], 2048  }
  0x1a   :  { %2422 = vsyncadd [#allocation8], 4294965248 }
  0x1b   :  { %2423 = dma.done.wait [#allocation11], 1024  }
  0x1c   :  { %2424 = vsyncadd [#allocation11], 4294966272  ;;  %v2144_v0 = vld [vmem:[%s3219_s1 + $0x38] sm:$0xff]  ;;  %v2143_v1 = vld [vmem:[%s3219_s1 + $0x30] sm:$0xff]  ;;  %s3237_s18 = sld [smem:[#allocation16_spill]] }
  0x1d   :  { %375 = vmatpush.bf16.msra.mxu0 %v2144_v0  ;;  %v2142_v2 = vld [vmem:[%s3219_s1 + $0x28] sm:$0xff]  ;;  %v2141_v3 = vld [vmem:[%s3219_s1 + $0x20] sm:$0xff]  ;;  %v2140_v4 = vld [vmem:[%s3219_s1 + $0x18] sm:$0xff] }
  0x1e   :  { %v2139_v5 = vld [vmem:[%s3219_s1 + $0x10] sm:$0xff]  ;;  %v2138_v6 = vld [vmem:[%s3219_s1 + $0x8] sm:$0xff]  ;;  %v2137_v7 = vld [vmem:[%s3219_s1] sm:$0xff] }
  0x1f   :  { %v2152_v13 = vld [vmem:[#allocation2 + $0x38] sm:$0xff]  ;;  %v2151_v14 = vld [vmem:[#allocation2 + $0x30] sm:$0xff]  ;;  %v2150_v16 = vld [vmem:[#allocation2 + $0x28] sm:$0xff] }
  0x20   :  { %512 = vmatpush.bf16.msra.mxu1 %v2152_v13  ;;  %v2149_v17 = vld [vmem:[#allocation2 + $0x20] sm:$0xff]  ;;  %v2148_v18 = vld [vmem:[#allocation2 + $0x18] sm:$0xff]  ;;  %v2147_v20 = vld [vmem:[#allocation2 + $0x10] sm:$0xff] }
  0x21   :  { %376 = vmatpush.bf16.msra.mxu0 %v2143_v1  ;;  %v2146_v21 = vld [vmem:[#allocation2 + $0x8] sm:$0xff]  ;;  %v2145_v22 = vld [vmem:[#allocation2] sm:$0xff]  ;;  %v232_v41 = vld [vmem:[%s3219_s1 + $0x10] sm:$0xff]  }
  0x22   :  { %v2581_v8 = vld [vmem:[%s3237_s18] sm:$0xff]  ;;  %v2587_v9 = vld [vmem:[%s3237_s18 + $0x8] sm:$0xff]  ;;  %v2593_v10 = vld [vmem:[%s3237_s18 + $0x10] sm:$0xff]  ;;  %v428_v42 = vunpack.c.l.bf16 %v232_v41  ;;  %v429_v43 = vunpack.c.h.bf16 %v232_v41 }
  0x23   :  { %v2599_v11 = vld [vmem:[%s3237_s18 + $0x18] sm:$0xff]  ;;  %v2605_v12 = vld [vmem:[%s3237_s18 + $0x20] sm:$0xff]  ;;  %v2611_v15 = vld [vmem:[%s3237_s18 + $0x28] sm:$0xff] }
  0x24   :  { %513 = vmatpush.bf16.msra.mxu1 %v2151_v14  ;;  %v2617_v19 = vld [vmem:[%s3237_s18 + $0x30] sm:$0xff]  ;;  %v2623_v23 = vld [vmem:[%s3237_s18 + $0x38] sm:$0xff]  ;;  %v228_v25 = vld [vmem:[%s3219_s1] sm:$0xff]  }
  0x25   :  { %377 = vmatpush.bf16.msra.mxu0 %v2142_v2  ;;  %v424_v26 = vunpack.c.l.bf16 %v228_v25  ;;  %v425_v27 = vunpack.c.h.bf16 %v228_v25  ;;  %v230_v33 = vld [vmem:[%s3219_s1 + $0x8] sm:$0xff]   ;;  %v234_v49 = vld [vmem:[%s3219_s1 + $0x18] sm:$0xff]   ;;  %v236_v57 = vld [vmem:[%s3219_s1 + $0x20] sm:$0xff]  }
  0x26   :  { %v426_v34 = vunpack.c.l.bf16 %v230_v33  ;;  %v427_v35 = vunpack.c.h.bf16 %v230_v33  ;;  %v430_v50 = vunpack.c.l.bf16 %v234_v49  ;;  %v431_v51 = vunpack.c.h.bf16 %v234_v49  ;;  %v238_v1 = vld [vmem:[%s3219_s1 + $0x28] sm:$0xff]   ;;  %v240_v14 = vld [vmem:[%s3219_s1 + $0x30] sm:$0xff]   ;;  %v242_v25 = vld [vmem:[%s3219_s1 + $0x38] sm:$0xff]  }
  0x27   :  { %v432_v58 = vunpack.c.l.bf16 %v236_v57  ;;  %v433_v59 = vunpack.c.h.bf16 %v236_v57  ;;  %v434_v2 = vunpack.c.l.bf16 %v238_v1 }
  0x28   :  { %514 = vmatpush.bf16.msra.mxu1 %v2150_v16  ;;  %v436_v16 = vunpack.c.l.bf16 %v240_v14 }
  0x29   :  { %378 = vmatpush.bf16.msra.mxu0 %v2141_v3  ;;  %v435_v3 = vunpack.c.h.bf16 %v238_v1 }
  0x2c   :  { %515 = vmatpush.bf16.msra.mxu1 %v2149_v17  ;;  %v437_v17 = vunpack.c.h.bf16 %v240_v14 }
  0x2d   :  { %379 = vmatpush.bf16.msra.mxu0 %v2140_v4 }
  0x30   :  { %516 = vmatpush.bf16.msra.mxu1 %v2148_v18 }
  0x31   :  { %380 = vmatpush.bf16.msra.mxu0 %v2139_v5 }
  0x34   :  { %517 = vmatpush.bf16.msra.mxu1 %v2147_v20 }
  0x35   :  { %381 = vmatpush.bf16.msra.mxu0 %v2138_v6 }
  0x38   :  { %518 = vmatpush.bf16.msra.mxu1 %v2146_v21 }
  0x39   :  { %382 = vmatpush.bf16.msra.mxu0 %v2137_v7 }
  0x3c   :  { %383 = vmatmul.bf16.vlgmr.msra.gmra.mxu0 %v2581_v8  ;;  %519 = vmatpush.bf16.msra.mxu1 %v2145_v22 }
  0x4c   :  { %388 = vmatmul.bf16.gmra.mxu0 %v2587_v9 }
  0x5c   :  { %393 = vmatmul.bf16.gmra.mxu0 %v2593_v10 }
  0x6c   :  { %398 = vmatmul.bf16.gmra.mxu0 %v2599_v11 }
  0x7c   :  { %403 = vmatmul.bf16.gmra.mxu0 %v2605_v12 }
  0x8c   :  { %408 = vmatmul.bf16.gmra.mxu0 %v2611_v15 }
  0x9c   :  { %413 = vmatmul.bf16.gmra.mxu0 %v2617_v19 }
  0xac   :  { %418 = vmatmul.bf16.gmra.mxu0 %v2623_v23 }
  0xb9   :  { %v384_v24 = vpop.f32.mrf.mxu0 }
  0xba   :  { %v440_v29 = vadd.f32 %v424_v26, %v384_v24  ;;  %v438_v26 = vunpack.c.l.bf16 %v242_v25 }
  0xc1   :  { %v386_v28 = vpop.f32.mrf.mxu0 }
  0xc2   :  { %v441_v30 = vadd.f32 %v425_v27, %v386_v28  ;;  %v439_v27 = vunpack.c.h.bf16 %v242_v25 }
  0xc4   :  { %v456_v31 = vpack.c.bf16 %v441_v30, %v440_v29 }
  0xc6   :  { %520 = vmatmul.bf16.vlgmr.msra.gmra.mxu1 %v456_v31 }
  0xc9   :  { %v389_v32 = vpop.f32.mrf.mxu0 }
  0xca   :  { %v442_v37 = vadd.f32 %v426_v34, %v389_v32 }
  0xd1   :  { %v391_v36 = vpop.f32.mrf.mxu0 }
  0xd2   :  { %v443_v38 = vadd.f32 %v427_v35, %v391_v36 }
  0xd4   :  { %v457_v39 = vpack.c.bf16 %v443_v38, %v442_v37 }
  0xd6   :  { %525 = vmatmul.bf16.gmra.mxu1 %v457_v39 }
  0xd9   :  { %v394_v40 = vpop.f32.mrf.mxu0 }
  0xda   :  { %v444_v45 = vadd.f32 %v428_v42, %v394_v40 }
  0xe1   :  { %v396_v44 = vpop.f32.mrf.mxu0 }
  0xe2   :  { %v445_v46 = vadd.f32 %v429_v43, %v396_v44 }
  0xe4   :  { %v458_v47 = vpack.c.bf16 %v445_v46, %v444_v45 }
  0xe6   :  { %530 = vmatmul.bf16.gmra.mxu1 %v458_v47 }
  0xe9   :  { %v399_v48 = vpop.f32.mrf.mxu0 }
  0xea   :  { %v446_v53 = vadd.f32 %v430_v50, %v399_v48 }
  0xf1   :  { %v401_v52 = vpop.f32.mrf.mxu0 }
  0xf2   :  { %v447_v54 = vadd.f32 %v431_v51, %v401_v52 }
  0xf4   :  { %v459_v55 = vpack.c.bf16 %v447_v54, %v446_v53 }
  0xf6   :  { %535 = vmatmul.bf16.gmra.mxu1 %v459_v55 }
  0xf9   :  { %v404_v56 = vpop.f32.mrf.mxu0 }
  0xfa   :  { %v448_v61 = vadd.f32 %v432_v58, %v404_v56 }
 0x101   :  { %v406_v60 = vpop.f32.mrf.mxu0 }
 0x102   :  { %v449_v62 = vadd.f32 %v433_v59, %v406_v60 }
 0x104   :  { %v460_v63 = vpack.c.bf16 %v449_v62, %v448_v61 }
 0x106   :  { %540 = vmatmul.bf16.gmra.mxu1 %v460_v63 }
 0x109   :  { %v409_v0 = vpop.f32.mrf.mxu0 }
 0x10a   :  { %v450_v5 = vadd.f32 %v434_v2, %v409_v0 }
 0x111   :  { %v411_v4 = vpop.f32.mrf.mxu0 }
 0x112   :  { %v451_v6 = vadd.f32 %v435_v3, %v411_v4 }
 0x114   :  { %v461_v7 = vpack.c.bf16 %v451_v6, %v450_v5 }
 0x116   :  { %545 = vmatmul.bf16.gmra.mxu1 %v461_v7 }
 0x119   :  { %v414_v13 = vpop.f32.mrf.mxu0 }
 0x11a   :  { %v452_v20 = vadd.f32 %v436_v16, %v414_v13 }
 0x121   :  { %v416_v18 = vpop.f32.mrf.mxu0 }
 0x122   :  { %v453_v21 = vadd.f32 %v437_v17, %v416_v18 }
 0x124   :  { %v462_v22 = vpack.c.bf16 %v453_v21, %v452_v20  ;;  %v2160_v21 = vld [vmem:[#allocation4 + $0x38] sm:$0xff] }
 0x125   :  { %751 = vmatpush.bf16.msra.mxu2 %v2160_v21 }
 0x126   :  { %550 = vmatmul.bf16.gmra.mxu1 %v462_v22 }
 0x129   :  { %v419_v24 = vpop.f32.mrf.mxu0 }
 0x12a   :  { %v454_v29 = vadd.f32 %v438_v26, %v419_v24 }
 0x131   :  { %v421_v28 = vpop.f32.mrf.mxu0 }
 0x132   :  { %v455_v30 = vadd.f32 %v439_v27, %v421_v28 }
 0x134   :  { %v463_v31 = vpack.c.bf16 %v455_v30, %v454_v29  ;;  %v2159_v29 = vld [vmem:[#allocation4 + $0x30] sm:$0xff] }
 0x135   :  { %752 = vmatpush.bf16.msra.mxu2 %v2159_v29 }
 0x136   :  { %555 = vmatmul.bf16.gmra.mxu1 %v463_v31 }
 0x143   :  { %v2650_v32 = vpop.f32.mrf.mxu1 }
 0x144   :  { %v582_v45 = vmul.f32 %v2650_v32, %v2650_v32 }
 0x14b   :  { %v2652_v33 = vpop.f32.mrf.mxu1 }
 0x14c   :  { %v583_v44 = vmul.f32 %v2652_v33, %v2652_v33  ;;  %v561_v46 = vadd.f32 %v2652_v33, %v2650_v32 }
 0x14e   :  { %v598_v49 = vadd.f32 %v583_v44, %v582_v45 }
 0x153   :  { %v2654_v34 = vpop.f32.mrf.mxu1 }
 0x154   :  { %v584_v47 = vmul.f32 %v2654_v34, %v2654_v34  ;;  %v562_v48 = vadd.f32 %v561_v46, %v2654_v34 }
 0x156   :  { %v599_v52 = vadd.f32 %v598_v49, %v584_v47 }
 0x15b   :  { %v2656_v35 = vpop.f32.mrf.mxu1 }
 0x15c   :  { %v585_v50 = vmul.f32 %v2656_v35, %v2656_v35  ;;  %v563_v53 = vadd.f32 %v562_v48, %v2656_v35  ;;  %v2158_v48 = vld [vmem:[#allocation4 + $0x28] sm:$0xff] }
 0x15d   :  { %753 = vmatpush.bf16.msra.mxu2 %v2158_v48 }
 0x15e   :  { %v600_v56 = vadd.f32 %v599_v52, %v585_v50 }
 0x163   :  { %v2658_v36 = vpop.f32.mrf.mxu1 }
 0x164   :  { %v586_v54 = vmul.f32 %v2658_v36, %v2658_v36  ;;  %v564_v55 = vadd.f32 %v563_v53, %v2658_v36 }
 0x166   :  { %v601_v58 = vadd.f32 %v600_v56, %v586_v54 }
 0x16b   :  { %v2660_v37 = vpop.f32.mrf.mxu1 }
 0x16c   :  { %v587_v57 = vmul.f32 %v2660_v37, %v2660_v37  ;;  %v565_v59 = vadd.f32 %v564_v55, %v2660_v37  ;;  %v2157_v55 = vld [vmem:[#allocation4 + $0x20] sm:$0xff] }
 0x16d   :  { %754 = vmatpush.bf16.msra.mxu2 %v2157_v55 }
 0x16e   :  { %v602_v62 = vadd.f32 %v601_v58, %v587_v57 }
 0x173   :  { %v2662_v38 = vpop.f32.mrf.mxu1 }
 0x174   :  { %v588_v60 = vmul.f32 %v2662_v38, %v2662_v38  ;;  %v566_v61 = vadd.f32 %v565_v59, %v2662_v38 }
 0x176   :  { %v603_v1 = vadd.f32 %v602_v62, %v588_v60  ;;  %v2156_v60 = vld [vmem:[#allocation4 + $0x18] sm:$0xff] }
 0x177   :  { %755 = vmatpush.bf16.msra.mxu2 %v2156_v60 }
 0x17b   :  { %v2664_v39 = vpop.f32.mrf.mxu1 }
 0x17c   :  { %v589_v63 = vmul.f32 %v2664_v39, %v2664_v39  ;;  %v567_v2 = vadd.f32 %v566_v61, %v2664_v39 }
 0x17e   :  { %v604_v5 = vadd.f32 %v603_v1, %v589_v63 }
 0x183   :  { %v2666_v40 = vpop.f32.mrf.mxu1 }
 0x184   :  { %v590_v3 = vmul.f32 %v2666_v40, %v2666_v40  ;;  %v568_v4 = vadd.f32 %v567_v2, %v2666_v40  ;;  %v2155_v2 = vld [vmem:[#allocation4 + $0x10] sm:$0xff] }
 0x185   :  { %756 = vmatpush.bf16.msra.mxu2 %v2155_v2 }
 0x186   :  { %v605_v7 = vadd.f32 %v604_v5, %v590_v3 }
 0x18b   :  { %v2668_v41 = vpop.f32.mrf.mxu1 }
 0x18c   :  { %v591_v6 = vmul.f32 %v2668_v41, %v2668_v41  ;;  %v569_v13 = vadd.f32 %v568_v4, %v2668_v41 }
 0x18e   :  { %v606_v16 = vadd.f32 %v605_v7, %v591_v6  ;;  %v2154_v7 = vld [vmem:[#allocation4 + $0x8] sm:$0xff] }
 0x18f   :  { %757 = vmatpush.bf16.msra.mxu2 %v2154_v7 }
 0x193   :  { %v2670_v42 = vpop.f32.mrf.mxu1 }
 0x194   :  { %v592_v14 = vmul.f32 %v2670_v42, %v2670_v42  ;;  %v570_v17 = vadd.f32 %v569_v13, %v2670_v42 }
 0x196   :  { %v607_v22 = vadd.f32 %v606_v16, %v592_v14  ;;  %v2153_v16 = vld [vmem:[#allocation4] sm:$0xff] }
 0x197   :  { %758 = vmatpush.bf16.msra.mxu2 %v2153_v16 }
 0x19b   :  { %v2672_v43 = vpop.f32.mrf.mxu1 }
 0x19c   :  { %v593_v18 = vmul.f32 %v2672_v43, %v2672_v43  ;;  %v571_v24 = vadd.f32 %v570_v17, %v2672_v43 }
 0x19e   :  { %v608_v26 = vadd.f32 %v607_v22, %v593_v18 }
 0x1a3   :  { %v2685_v51 = vpop.f32.mrf.mxu1 }
 0x1a4   :  { %v594_v25 = vmul.f32 %v2685_v51, %v2685_v51  ;;  %v572_v27 = vadd.f32 %v571_v24, %v2685_v51 }
 0x1a6   :  { %v609_v30 = vadd.f32 %v608_v26, %v594_v25 }
 0x1ab   :  { %v2699_v0 = vpop.f32.mrf.mxu1 }
 0x1ac   :  { %v595_v28 = vmul.f32 %v2699_v0, %v2699_v0  ;;  %v573_v31 = vadd.f32 %v572_v27, %v2699_v0 }
 0x1ae   :  { %v610_v45 = vadd.f32 %v609_v30, %v595_v28  ;;  %v260_v28 = vld [vmem:[%s3221_s3] sm:$0x1] }
 0x1b3   :  { %v2713_v20 = vpop.f32.mrf.mxu1 }
 0x1b4   :  { %v596_v44 = vmul.f32 %v2713_v20, %v2713_v20  ;;  %v574_v46 = vadd.f32 %v573_v31, %v2713_v20 }
 0x1b6   :  { %v611_v49 = vadd.f32 %v610_v45, %v596_v44  ;;  %v261_v44 = vld [vmem:[%s3222_s4] sm:$0x1] }
 0x1bb   :  { %v2725_v47 = vpop.f32.mrf.mxu1 }
 0x1bc   :  { %v575_v50 = vadd.f32 %v574_v46, %v2725_v47  ;;  %v597_v52 = vmul.f32 %v2725_v47, %v2725_v47 }
 0x1be   :  { %v576_v53 = vrot.slane %v575_v50, 4  ;;  %v612_v54 = vadd.f32 %v611_v49, %v597_v52 }
 0x1c0   :  { %v577_v56 = vadd.f32 %v576_v53, %v575_v50  ;;  %v613_v57 = vrot.slane %v612_v54, 4 }
 0x1c2   :  { %v578_v58 = vrot.slane %v577_v56, 2  ;;  %v614_v59 = vadd.f32 %v613_v57, %v612_v54 }
 0x1c4   :  { %v579_v61 = vadd.f32 %v578_v58, %v577_v56  ;;  %v615_v62 = vrot.slane %v614_v59, 2 }
 0x1c6   :  { %v580_v63 = vrot.slane %v579_v61, 1  ;;  %v616_v1 = vadd.f32 %v615_v62, %v614_v59 }
 0x1c8   :  { %v581_v3 = vadd.f32 %v580_v63, %v579_v61  ;;  %v617_v4 = vrot.slane %v616_v1, 1 }
 0x1ca   :  { %v618_v5 = vadd.f32 %v617_v4, %v616_v1  ;;  %v619_v6 = vmul.f32 0.125, %v581_v3 }
 0x1cc   :  { %v620_v13 = vmul.f32 0.125, %v618_v5  ;;  %v621_v14 = vmul.f32 %v619_v6, %v619_v6 }
 0x1ce   :  { %v622_v17 = vsub.f32 %v620_v13, %v621_v14 }
 0x1d0   :  { %v623_v18 = vmax.f32 %v622_v17, 0.0 }
 0x1d2   :  { %v624_v21 = vadd.f32 1e-05, %v623_v18 }
 0x1d4   :  { %2205 = vrsqrt.f32 %v624_v21  ;;  %vm631_vm1 = vweird.f32 %v624_v21 }
 0x1da   :  { %v2206_v22 = vpop.eup %2205 }
 0x1db   :  { %v626_v24 = vmul.f32 %v2206_v22, %v624_v21  ;;  %vm632_vm0 = vweird.f32 %v2206_v22 }
 0x1dc   :  { %vm633_vm2 = vmor %vm631_vm1, %vm632_vm0 }
 0x1dd   :  { %v627_v25 = vmul.f32 %v2206_v22, %v626_v24 }
 0x1df   :  { %v628_v26 = vmul.f32 0.5, %v627_v25 }
 0x1e1   :  { %v629_v27 = vsub.f32 1.5, %v628_v26 }
 0x1e3   :  { %v630_v29 = vmul.f32 %v2206_v22, %v629_v27 }
 0x1e5   :  { %v634_v30 = vsel %vm633_vm2, %v2206_v22, %v630_v29 }
 0x1e6   :  { %v635_v31 = vmul.f32 %v634_v30, %v260_v28 }
 0x1e8   :  { %v636_v45 = vmul.f32 %v635_v31, %v619_v6  ;;  %v639_v46 = vperm.slane %v635_v31, 0 }
 0x1ea   :  { %v637_v48 = vsub.f32 %v261_v44, %v636_v45  ;;  %v641_v50 = vmul.f32 %v639_v46, %v2650_v32  ;;  %v642_v52 = vmul.f32 %v639_v46, %v2652_v33  ;;  %v649_v57 = vmul.f32 %v639_v46, %v2666_v40 }
 0x1eb   :  { %v650_v58 = vmul.f32 %v639_v46, %v2668_v41  ;;  %v651_v59 = vmul.f32 %v639_v46, %v2670_v42  ;;  %v652_v60 = vmul.f32 %v639_v46, %v2672_v43  ;;  %v653_v1 = vmul.f32 %v639_v46, %v2685_v51 }
 0x1ec   :  { %v658_v49 = vperm.slane %v637_v48, 0  ;;  %v656_v32 = vmul.f32 %v639_v46, %v2725_v47  ;;  %v654_v40 = vmul.f32 %v639_v46, %v2699_v0  ;;  %v655_v42 = vmul.f32 %v639_v46, %v2713_v20 }
 0x1ed   :  { %v643_v47 = vmul.f32 %v639_v46, %v2654_v34  ;;  %v644_v18 = vmul.f32 %v639_v46, %v2656_v35  ;;  %v645_v29 = vmul.f32 %v639_v46, %v2658_v36  ;;  %v646_v30 = vmul.f32 %v639_v46, %v2660_v37 }
 0x1ee   :  { %v660_v53 = vadd.f32 %v658_v49, %v641_v50  ;;  %v661_v54 = vadd.f32 %v658_v49, %v642_v52  ;;  %v668_v62 = vadd.f32 %v658_v49, %v649_v57  ;;  %v669_v63 = vadd.f32 %v658_v49, %v650_v58 }
 0x1ef   :  { %v670_v33 = vadd.f32 %v658_v49, %v651_v59  ;;  %v671_v2 = vadd.f32 %v658_v49, %v652_v60  ;;  %v672_v5 = vadd.f32 %v658_v49, %v653_v1  ;;  %v675_v43 = vadd.f32 %v658_v49, %v656_v32  ;;  %v2761_v32 = vld [vmem:[%s3224_s6] ss:$0 sm:$0xff] }
 0x1f0   :  { %v676_v55 = vmax.f32 %v660_v53, 0.0  ;;  %v677_v56 = vmax.f32 %v661_v54, 0.0  ;;  %v684_v3 = vmax.f32 %v668_v62, 0.0  ;;  %v685_v4 = vmax.f32 %v669_v63, 0.0 }
 0x1f1   :  { %v686_v41 = vmax.f32 %v670_v33, 0.0  ;;  %v687_v6 = vmax.f32 %v671_v2, 0.0  ;;  %v673_v13 = vadd.f32 %v658_v49, %v654_v40  ;;  %v688_v14 = vmax.f32 %v672_v5, 0.0 }
 0x1f2   :  { %v692_v61 = vpack.c.bf16 %v677_v56, %v676_v55  ;;  %v696_v7 = vpack.c.bf16 %v685_v4, %v684_v3  ;;  %v674_v51 = vadd.f32 %v658_v49, %v655_v42  ;;  %v691_v17 = vmax.f32 %v675_v43, 0.0 }
 0x1f3   :  { %v697_v16 = vpack.c.bf16 %v687_v6, %v686_v41  ;;  %v689_v21 = vmax.f32 %v673_v13, 0.0  ;;  %v662_v24 = vadd.f32 %v658_v49, %v643_v47  ;;  %v663_v0 = vadd.f32 %v658_v49, %v644_v18 }
 0x1f4   :  { %759 = vmatmul.bf16.vlgmr.msra.gmra.mxu2 %v692_v61  ;;  %v690_v22 = vmax.f32 %v674_v51, 0.0  ;;  %v664_v31 = vadd.f32 %v658_v49, %v645_v29  ;;  %v665_v44 = vadd.f32 %v658_v49, %v646_v30  ;;  %v647_v35 = vmul.f32 %v639_v46, %v2662_v38 }
 0x1f5   :  { %v698_v25 = vpack.c.bf16 %v689_v21, %v688_v14  ;;  %v678_v27 = vmax.f32 %v662_v24, 0.0  ;;  %v679_v28 = vmax.f32 %v663_v0, 0.0  ;;  %v648_v50 = vmul.f32 %v639_v46, %v2664_v39 }
 0x1f6   :  { %v699_v26 = vpack.c.bf16 %v691_v17, %v690_v22  ;;  %v680_v45 = vmax.f32 %v664_v31, 0.0  ;;  %v681_v34 = vmax.f32 %v665_v44, 0.0  ;;  %v666_v52 = vadd.f32 %v658_v49, %v647_v35 }
 0x1f7   :  { %v693_v20 = vpack.c.bf16 %v679_v28, %v678_v27  ;;  %v667_v53 = vadd.f32 %v658_v49, %v648_v50 }
 0x1f8   :  { %v694_v48 = vpack.c.bf16 %v681_v34, %v680_v45  ;;  %v682_v54 = vmax.f32 %v666_v52, 0.0 }
 0x1f9   :  { %v683_v55 = vmax.f32 %v667_v53, 0.0 }
 0x1fb   :  { %v695_v56 = vpack.c.bf16 %v683_v55, %v682_v54 }
 0x204   :  { %764 = vmatmul.bf16.gmra.mxu2 %v693_v20 }
 0x214   :  { %769 = vmatmul.bf16.gmra.mxu2 %v694_v48 }
 0x224   :  { %774 = vmatmul.bf16.gmra.mxu2 %v695_v56 }
 0x234   :  { %779 = vmatmul.bf16.gmra.mxu2 %v696_v7 }
 0x244   :  { %784 = vmatmul.bf16.gmra.mxu2 %v697_v16 }
 0x254   :  { %789 = vmatmul.bf16.gmra.mxu2 %v698_v25 }
 0x264   :  { %794 = vmatmul.bf16.gmra.mxu2 %v699_v26 }
 0x277   :  { %v2752_v36 = vpop.f32.mrf.mxu2 }
 0x27f   :  { %v2754_v37 = vpop.f32.mrf.mxu2 }
 0x287   :  { %v2756_v57 = vpop.f32.mrf.mxu2 }
 0x28f   :  { %v767_v58 = vpop.f32.mrf.mxu2 }
 0x297   :  { %v770_v38 = vpop.f32.mrf.mxu2 }
 0x298   :  { %v771_v54 = vadd.f32 %v2761_v32, %v770_v38 }
 0x29a   :  { %v804_v38 = vmax.f32 %v771_v54, 0.0 }
 0x29f   :  { %v772_v59 = vpop.f32.mrf.mxu2 }
 0x2a0   :  { %v773_v34 = vadd.f32 %v2761_v32, %v772_v59 }
 0x2a7   :  { %v775_v39 = vpop.f32.mrf.mxu2 }
 0x2a8   :  { %v776_v20 = vadd.f32 %v2761_v32, %v775_v39 }
 0x2aa   :  { %v806_v55 = vmax.f32 %v776_v20, 0.0  ;;  %v2168_v20 = vld [vmem:[#allocation6 + $0x38] sm:$0xff] }
 0x2ab   :  { %1068 = vmatpush.bf16.msrb.mxu0 %v2168_v20 }
 0x2af   :  { %v777_v46 = vpop.f32.mrf.mxu2 }
 0x2b0   :  { %v778_v0 = vadd.f32 %v2761_v32, %v777_v46 }
 0x2b2   :  { %v807_v48 = vmax.f32 %v778_v0, 0.0 }
 0x2b4   :  { %v823_v59 = vmul.f32 0.0, %v807_v48 }
 0x2b7   :  { %v780_v49 = vpop.f32.mrf.mxu2 }
 0x2b8   :  { %v781_v47 = vadd.f32 %v2761_v32, %v780_v49  ;;  %v768_v49 = vadd.f32 %v2761_v32, %v767_v58  ;;  %v763_v58 = vadd.f32 %v2761_v32, %v2754_v37 }
 0x2ba   :  { %v808_v29 = vmax.f32 %v781_v47, 0.0 }
 0x2bc   :  { %v824_v56 = vmul.f32 0.0, %v808_v29 }
 0x2bf   :  { %v782_v60 = vpop.f32.mrf.mxu2 }
 0x2c0   :  { %v783_v14 = vadd.f32 %v2761_v32, %v782_v60  ;;  %v805_v60 = vmax.f32 %v773_v34, 0.0 }
 0x2c2   :  { %v809_v25 = vmax.f32 %v783_v14, 0.0 }
 0x2c4   :  { %v825_v35 = vmul.f32 0.0, %v809_v25 }
 0x2c7   :  { %v785_v61 = vpop.f32.mrf.mxu2 }
 0x2c8   :  { %v786_v42 = vadd.f32 %v2761_v32, %v785_v61  ;;  %v2792_v61 = vpack.c.bf16 %v825_v35, %v825_v35 }
 0x2ca   :  { %v810_v18 = vmax.f32 %v786_v42, 0.0 }
 0x2cc   :  { %v826_v30 = vmul.f32 0.0, %v810_v18 }
 0x2ce   :  { %v2788_v39 = vpack.c.bf16 %v826_v30, %v826_v30 }
 0x2cf   :  { %v787_v62 = vpop.f32.mrf.mxu2 }
 0x2d0   :  { %v788_v5 = vadd.f32 %v2761_v32, %v787_v62 }
 0x2d2   :  { %v811_v16 = vmax.f32 %v788_v5, 0.0  ;;  %v2802_v5 = vpack.c.bf16 %v823_v59, %v823_v59  ;;  %v2161_v59 = vld [vmem:[#allocation6] sm:$0xff] }
 0x2d4   :  { %v827_v26 = vmul.f32 0.0, %v811_v16  ;;  %v906_v37 = vunpack.c.l.b16 %v2802_v5 }
 0x2d6   :  { %v2784_v50 = vpack.c.bf16 %v827_v26, %v827_v26 }
 0x2d7   :  { %v790_v63 = vpop.f32.mrf.mxu2 }
 0x2d8   :  { %v791_v4 = vadd.f32 %v2761_v32, %v790_v63  ;;  %v910_v63 = vunpack.c.l.b16 %v2784_v50 }
 0x2da   :  { %v812_v43 = vmax.f32 %v791_v4, 0.0  ;;  %v803_v4 = vmax.f32 %v768_v49, 0.0  ;;  %v2164_v49 = vld [vmem:[#allocation6 + $0x18] sm:$0xff] }
 0x2dc   :  { %v828_v21 = vmul.f32 0.0, %v812_v43  ;;  %v820_v43 = vmul.f32 0.0, %v804_v38  ;;  %v819_v14 = vmul.f32 0.0, %v803_v4 }
 0x2de   :  { %v2779_v31 = vpack.c.bf16 %v828_v21, %v828_v21  ;;  %v2813_v18 = vpack.c.bf16 %v820_v43, %v820_v43  ;;  %v835_v0 = vpack.c.bf16 %v819_v14, %v819_v14 }
 0x2df   :  { %v792_v1 = vpop.f32.mrf.mxu2 }
 0x2e0   :  { %v793_v3 = vadd.f32 %v2761_v32, %v792_v1  ;;  %v911_v46 = vunpack.c.l.b16 %v2779_v31  ;;  %v766_v1 = vadd.f32 %v2761_v32, %v2756_v57 }
 0x2e2   :  { %v813_v41 = vmax.f32 %v793_v3, 0.0  ;;  %v909_v3 = vunpack.c.l.b16 %v2788_v39  ;;  %v802_v42 = vmax.f32 %v766_v1, 0.0 }
 0x2e4   :  { %v829_v51 = vmul.f32 0.0, %v813_v41  ;;  %v920_v41 = vpack.c.b16 %v910_v63, %v909_v3  ;;  %v818_v47 = vmul.f32 0.0, %v802_v42  ;;  %v983_v3 = vunpack.c.l.bf16 %v835_v0 }
 0x2e6   :  { %v2774_v27 = vpack.c.bf16 %v829_v51, %v829_v51  ;;  %v834_v30 = vpack.c.bf16 %v818_v47, %v818_v47 }
 0x2e7   :  { %v795_v33 = vpop.f32.mrf.mxu2 }
 0x2e8   :  { %v796_v2 = vadd.f32 %v2761_v32, %v795_v33  ;;  %v912_v53 = vunpack.c.l.b16 %v2774_v27  ;;  %v822_v33 = vmul.f32 0.0, %v806_v55  ;;  %v901_v48 = vunpack.c.l.b16 %v834_v30  ;;  %v2167_v55 = vld [vmem:[#allocation6 + $0x30] sm:$0xff] }
 0x2e9   :  { %1069 = vmatpush.bf16.msrb.mxu0 %v2167_v55 }
 0x2ea   :  { %v814_v40 = vmax.f32 %v796_v2, 0.0  ;;  %v921_v62 = vpack.c.b16 %v912_v53, %v911_v46  ;;  %v2797_v2 = vpack.c.bf16 %v824_v56, %v824_v56  ;;  %v2805_v57 = vpack.c.bf16 %v822_v33, %v822_v33  ;;  %v2166_v56 = vld [vmem:[#allocation6 + $0x28] sm:$0xff]  ;;  %v2165_v46 = vld [vmem:[#allocation6 + $0x20] sm:$0xff] }
 0x2eb   :  { %v982_v33 = vunpack.c.l.bf16 %v834_v30 }
 0x2ec   :  { %v830_v7 = vmul.f32 0.0, %v814_v40  ;;  %v821_v40 = vmul.f32 0.0, %v805_v60  ;;  %v905_v21 = vunpack.c.l.b16 %v2805_v57  ;;  %v2163_v60 = vld [vmem:[#allocation6 + $0x10] sm:$0xff]  ;;  %v986_v14 = vunpack.c.l.bf16 %v2805_v57 }
 0x2ed   :  { %1070 = vmatpush.bf16.msrb.mxu0 %v2166_v56  ;;  %v990_v57 = vunpack.c.l.bf16 %v2788_v39 }
 0x2ee   :  { %v2771_v22 = vpack.c.bf16 %v830_v7, %v830_v7  ;;  %v907_v7 = vunpack.c.l.b16 %v2797_v2  ;;  %v2808_v16 = vpack.c.bf16 %v821_v40, %v821_v40  ;;  %v918_v25 = vpack.c.b16 %v906_v37, %v905_v21 }
 0x2ef   :  { %v797_v6 = vpop.f32.mrf.mxu2 }
 0x2f0   :  { %v798_v13 = vadd.f32 %v2761_v32, %v797_v6  ;;  %v913_v44 = vunpack.c.l.b16 %v2771_v22  ;;  %v908_v6 = vunpack.c.l.b16 %v2792_v61  ;;  %v904_v26 = vunpack.c.l.b16 %v2808_v16 }
 0x2f1   :  { %1071 = vmatpush.bf16.msrb.mxu0 %v2165_v46  ;;  %v994_v39 = vunpack.c.l.bf16 %v2771_v22  ;;  %v2175_v22 = vld [vmem:[#allocation7 + $0x30] sm:$0xff] }
 0x2f2   :  { %v815_v17 = vmax.f32 %v798_v13, 0.0  ;;  %v801_v13 = vmax.f32 %v763_v58, 0.0  ;;  %v919_v51 = vpack.c.b16 %v908_v6, %v907_v7 }
 0x2f4   :  { %v831_v24 = vmul.f32 0.0, %v815_v17  ;;  %v761_v17 = vadd.f32 %v2761_v32, %v2752_v36  ;;  %v902_v32 = vunpack.c.l.b16 %v835_v0 }
 0x2f5   :  { %1072 = vmatpush.bf16.msrb.mxu0 %v2164_v49 }
 0x2f6   :  { %v2776_v28 = vpack.c.bf16 %v831_v24, %v831_v24  ;;  %v817_v24 = vmul.f32 0.0, %v801_v13  ;;  %v800_v29 = vmax.f32 %v761_v17, 0.0  ;;  %v916_v35 = vpack.c.b16 %v902_v32, %v901_v48 }
 0x2f8   :  { %v914_v45 = vunpack.c.l.b16 %v2776_v28  ;;  %v832_v34 = vpack.c.bf16 %v800_v29, %v800_v29 }
 0x2f9   :  { %1073 = vmatpush.bf16.msrb.mxu0 %v2163_v60  ;;  %v2176_v60 = vld [vmem:[#allocation7 + $0x38] sm:$0xff] }
 0x2fa   :  { %v922_v52 = vpack.c.b16 %v914_v45, %v913_v44  ;;  %v903_v44 = vunpack.c.l.b16 %v2813_v18  ;;  %v833_v45 = vpack.c.bf16 %v817_v24, %v817_v24  ;;  %v899_v53 = vunpack.c.l.b16 %v832_v34  ;;  %1307 = vmatpush.bf16.msrb.mxu1 %v2176_v60 }
 0x2fc   :  { %931 = vmatpush.bf16.msra.mxu3 %v922_v52  ;;  %v917_v36 = vpack.c.b16 %v904_v26, %v903_v44  ;;  %v900_v52 = vunpack.c.l.b16 %v833_v45 }
 0x2fe   :  { %v915_v54 = vpack.c.b16 %v900_v52, %v899_v53  ;;  %1308 = vmatpush.bf16.msrb.mxu1 %v2175_v22 }
 0x300   :  { %932 = vmatpush.bf16.msra.mxu3 %v921_v62  ;;  %v981_v62 = vunpack.c.l.bf16 %v833_v45 }
 0x304   :  { %933 = vmatpush.bf16.msra.mxu3 %v920_v41 }
 0x308   :  { %934 = vmatpush.bf16.msra.mxu3 %v919_v51  ;;  %v987_v51 = vunpack.c.l.bf16 %v2802_v5  ;;  %v991_v5 = vunpack.c.l.bf16 %v2784_v50  ;;  %v995_v50 = vunpack.c.l.bf16 %v2776_v28 }
 0x30c   :  { %935 = vmatpush.bf16.msra.mxu3 %v918_v25 }
 0x310   :  { %936 = vmatpush.bf16.msra.mxu3 %v917_v36 }
 0x314   :  { %937 = vmatpush.bf16.msra.mxu3 %v916_v35 }
 0x318   :  { %938 = vmatpush.bf16.msra.mxu3 %v915_v54 }
 0x31b   :  { %939 = vmatmul.bf16.vlgmr.msra.gmra.mxu3 %v2581_v8  ;;  %v2162_v8 = vld [vmem:[#allocation6 + $0x8] sm:$0xff] }
 0x31c   :  { %1074 = vmatpush.bf16.msrb.mxu0 %v2162_v8 }
 0x320   :  { %1075 = vmatpush.bf16.msrb.mxu0 %v2161_v59 }
 0x32b   :  { %944 = vmatmul.bf16.gmra.mxu3 %v2587_v9 }
 0x33b   :  { %949 = vmatmul.bf16.gmra.mxu3 %v2593_v10  ;;  %v980_v10 = vunpack.c.l.bf16 %v832_v34 }
 0x34b   :  { %954 = vmatmul.bf16.gmra.mxu3 %v2599_v11 }
 0x35b   :  { %959 = vmatmul.bf16.gmra.mxu3 %v2605_v12 }
 0x36b   :  { %964 = vmatmul.bf16.gmra.mxu3 %v2611_v15 }
 0x37b   :  { %969 = vmatmul.bf16.gmra.mxu3 %v2617_v19  ;;  %v984_v19 = vunpack.c.l.bf16 %v2813_v18  ;;  %v988_v18 = vunpack.c.l.bf16 %v2797_v2  ;;  %v992_v2 = vunpack.c.l.bf16 %v2779_v31 }
 0x38b   :  { %974 = vmatmul.bf16.gmra.mxu3 %v2623_v23  ;;  %v985_v23 = vunpack.c.l.bf16 %v2808_v16  ;;  %v989_v16 = vunpack.c.l.bf16 %v2792_v61  ;;  %v993_v61 = vunpack.c.l.bf16 %v2774_v27 }
 0x39e   :  { %v940_v9 = vpop.f32.mrf.mxu3 }
 0x39f   :  { %v996_v63 = vadd.f32 %v980_v10, %v940_v9  ;;  %v2174_v10 = vld [vmem:[#allocation7 + $0x28] sm:$0xff] }
 0x3a0   :  { %1309 = vmatpush.bf16.msrb.mxu1 %v2174_v10 }
 0x3a6   :  { %v942_v11 = vpop.f32.mrf.mxu3 }
 0x3a7   :  { %v997_v1 = vadd.f32 %v981_v62, %v942_v11 }
 0x3a9   :  { %v1012_v38 = vpack.c.bf16 %v997_v1, %v996_v63  ;;  %v2173_v63 = vld [vmem:[#allocation7 + $0x20] sm:$0xff] }
 0x3aa   :  { %1310 = vmatpush.bf16.msrb.mxu1 %v2173_v63 }
 0x3ab   :  { %1076 = vmatmul.bf16.vlgmr.msrb.gmra.mxu0 %v1012_v38 }
 0x3ae   :  { %v945_v12 = vpop.f32.mrf.mxu3 }
 0x3af   :  { %v998_v58 = vadd.f32 %v982_v33, %v945_v12  ;;  %v2172_v12 = vld [vmem:[#allocation7 + $0x18] sm:$0xff] }
 0x3b0   :  { %1311 = vmatpush.bf16.msrb.mxu1 %v2172_v12 }
 0x3b6   :  { %v947_v15 = vpop.f32.mrf.mxu3 }
 0x3b7   :  { %v999_v4 = vadd.f32 %v983_v3, %v947_v15 }
 0x3b9   :  { %v1013_v40 = vpack.c.bf16 %v999_v4, %v998_v58 }
 0x3bb   :  { %1081 = vmatmul.bf16.gmra.mxu0 %v1013_v40 }
 0x3be   :  { %v950_v41 = vpop.f32.mrf.mxu3 }
 0x3bf   :  { %v1000_v42 = vadd.f32 %v984_v19, %v950_v41 }
 0x3c6   :  { %v952_v6 = vpop.f32.mrf.mxu3 }
 0x3c7   :  { %v1001_v43 = vadd.f32 %v985_v23, %v952_v6 }
 0x3c9   :  { %v1014_v7 = vpack.c.bf16 %v1001_v43, %v1000_v42 }
 0x3cb   :  { %1086 = vmatmul.bf16.gmra.mxu0 %v1014_v7 }
 0x3ce   :  { %v955_v13 = vpop.f32.mrf.mxu3 }
 0x3cf   :  { %v1002_v17 = vadd.f32 %v986_v14, %v955_v13 }
 0x3d6   :  { %v957_v37 = vpop.f32.mrf.mxu3 }
 0x3d7   :  { %v1003_v47 = vadd.f32 %v987_v51, %v957_v37 }
 0x3d9   :  { %v1015_v21 = vpack.c.bf16 %v1003_v47, %v1002_v17 }
 0x3db   :  { %1091 = vmatmul.bf16.gmra.mxu0 %v1015_v21 }
 0x3de   :  { %v960_v24 = vpop.f32.mrf.mxu3 }
 0x3df   :  { %v1004_v25 = vadd.f32 %v988_v18, %v960_v24 }
 0x3e6   :  { %v962_v0 = vpop.f32.mrf.mxu3 }
 0x3e7   :  { %v1005_v26 = vadd.f32 %v989_v16, %v962_v0 }
 0x3e9   :  { %v1016_v20 = vpack.c.bf16 %v1005_v26, %v1004_v25 }
 0x3eb   :  { %1096 = vmatmul.bf16.gmra.mxu0 %v1016_v20 }
 0x3ee   :  { %v965_v29 = vpop.f32.mrf.mxu3 }
 0x3ef   :  { %v1006_v44 = vadd.f32 %v990_v57, %v965_v29 }
 0x3f6   :  { %v967_v30 = vpop.f32.mrf.mxu3 }
 0x3f7   :  { %v1007_v45 = vadd.f32 %v991_v5, %v967_v30 }
 0x3f9   :  { %v1017_v36 = vpack.c.bf16 %v1007_v45, %v1006_v44 }
 0x3fb   :  { %1101 = vmatmul.bf16.gmra.mxu0 %v1017_v36 }
 0x3fe   :  { %v970_v32 = vpop.f32.mrf.mxu3 }
 0x3ff   :  { %v1008_v48 = vadd.f32 %v992_v2, %v970_v32 }
 0x406   :  { %v972_v34 = vpop.f32.mrf.mxu3 }
 0x407   :  { %v1009_v35 = vadd.f32 %v993_v61, %v972_v34 }
 0x409   :  { %v1018_v52 = vpack.c.bf16 %v1009_v35, %v1008_v48 }
 0x40b   :  { %1106 = vmatmul.bf16.gmra.mxu0 %v1018_v52 }
 0x40e   :  { %v975_v53 = vpop.f32.mrf.mxu3 }
 0x40f   :  { %v1010_v55 = vadd.f32 %v994_v39, %v975_v53 }
 0x416   :  { %v977_v54 = vpop.f32.mrf.mxu3 }
 0x417   :  { %v1011_v56 = vadd.f32 %v995_v50, %v977_v54 }
 0x419   :  { %v1019_v46 = vpack.c.bf16 %v1011_v56, %v1010_v55 }
 0x41b   :  { %1111 = vmatmul.bf16.gmra.mxu0 %v1019_v46 }
 0x428   :  { %v2838_v49 = vpop.f32.mrf.mxu0 }
 0x429   :  { %v1138_v15 = vmul.f32 %v2838_v49, %v2838_v49 }
 0x430   :  { %v2840_v31 = vpop.f32.mrf.mxu0 }
 0x431   :  { %v1139_v3 = vmul.f32 %v2840_v31, %v2840_v31  ;;  %v1117_v58 = vadd.f32 %v2840_v31, %v2838_v49 }
 0x433   :  { %v1154_v40 = vadd.f32 %v1139_v3, %v1138_v15 }
 0x438   :  { %v2842_v27 = vpop.f32.mrf.mxu0 }
 0x439   :  { %v1140_v4 = vmul.f32 %v2842_v27, %v2842_v27  ;;  %v1118_v41 = vadd.f32 %v1117_v58, %v2842_v27 }
 0x43b   :  { %v1155_v6 = vadd.f32 %v1154_v40, %v1140_v4 }
 0x440   :  { %v2844_v8 = vpop.f32.mrf.mxu0 }
 0x441   :  { %v1141_v19 = vmul.f32 %v2844_v8, %v2844_v8  ;;  %v1119_v42 = vadd.f32 %v1118_v41, %v2844_v8 }
 0x443   :  { %v1156_v7 = vadd.f32 %v1155_v6, %v1141_v19 }
 0x448   :  { %v2846_v59 = vpop.f32.mrf.mxu0 }
 0x449   :  { %v1142_v43 = vmul.f32 %v2846_v59, %v2846_v59  ;;  %v1120_v13 = vadd.f32 %v1119_v42, %v2846_v59 }
 0x44b   :  { %v1157_v51 = vadd.f32 %v1156_v7, %v1142_v43 }
 0x450   :  { %v2848_v28 = vpop.f32.mrf.mxu0 }
 0x451   :  { %v1143_v14 = vmul.f32 %v2848_v28, %v2848_v28  ;;  %v1121_v37 = vadd.f32 %v1120_v13, %v2848_v28 }
 0x453   :  { %v1158_v47 = vadd.f32 %v1157_v51, %v1143_v14 }
 0x458   :  { %v2850_v9 = vpop.f32.mrf.mxu0 }
 0x459   :  { %v1144_v17 = vmul.f32 %v2850_v9, %v2850_v9  ;;  %v1122_v21 = vadd.f32 %v1121_v37, %v2850_v9 }
 0x45b   :  { %v1159_v16 = vadd.f32 %v1158_v47, %v1144_v17  ;;  %v2171_v17 = vld [vmem:[#allocation7 + $0x10] sm:$0xff] }
 0x45c   :  { %1312 = vmatpush.bf16.msrb.mxu1 %v2171_v17 }
 0x460   :  { %v2852_v62 = vpop.f32.mrf.mxu0 }
 0x461   :  { %v1145_v24 = vmul.f32 %v2852_v62, %v2852_v62  ;;  %v1123_v0 = vadd.f32 %v1122_v21, %v2852_v62  ;;  %v2170_v21 = vld [vmem:[#allocation7 + $0x8] sm:$0xff] }
 0x462   :  { %1313 = vmatpush.bf16.msrb.mxu1 %v2170_v21 }
 0x463   :  { %v1160_v26 = vadd.f32 %v1159_v16, %v1145_v24  ;;  %v2184_v24 = vld [vmem:[#allocation9 + $0x38] sm:$0xff]  ;;  %v2169_v16 = vld [vmem:[#allocation7] sm:$0xff] }
 0x464   :  { %1464 = vmatpush.bf16.msrb.mxu2 %v2184_v24 }
 0x466   :  { %1314 = vmatpush.bf16.msrb.mxu1 %v2169_v16 }
 0x468   :  { %v2854_v11 = vpop.f32.mrf.mxu0 }
 0x469   :  { %v1146_v25 = vmul.f32 %v2854_v11, %v2854_v11  ;;  %v1124_v20 = vadd.f32 %v1123_v0, %v2854_v11 }
 0x46b   :  { %v1161_v57 = vadd.f32 %v1160_v26, %v1146_v25 }
 0x470   :  { %v2856_v1 = vpop.f32.mrf.mxu0 }
 0x471   :  { %v1147_v29 = vmul.f32 %v2856_v1, %v2856_v1  ;;  %v1125_v5 = vadd.f32 %v1124_v20, %v2856_v1 }
 0x473   :  { %v1162_v44 = vadd.f32 %v1161_v57, %v1147_v29  ;;  %v864_v57 = vld [vmem:[%s3226_s8] sm:$0x1] }
 0x478   :  { %v2858_v38 = vpop.f32.mrf.mxu0 }
 0x479   :  { %v1148_v30 = vmul.f32 %v2858_v38, %v2858_v38  ;;  %v1126_v45 = vadd.f32 %v1125_v5, %v2858_v38 }
 0x47b   :  { %v1163_v2 = vadd.f32 %v1162_v44, %v1148_v30  ;;  %v2183_v30 = vld [vmem:[#allocation9 + $0x30] sm:$0xff] }
 0x47c   :  { %1465 = vmatpush.bf16.msrb.mxu2 %v2183_v30 }
 0x480   :  { %v2860_v33 = vpop.f32.mrf.mxu0 }
 0x481   :  { %v1149_v36 = vmul.f32 %v2860_v33, %v2860_v33  ;;  %v1127_v61 = vadd.f32 %v1126_v45, %v2860_v33 }
 0x483   :  { %v1164_v48 = vadd.f32 %v1163_v2, %v1149_v36  ;;  %v865_v36 = vld [vmem:[%s3227_s9] sm:$0x1] }
 0x488   :  { %v2873_v23 = vpop.f32.mrf.mxu0 }
 0x489   :  { %v1150_v34 = vmul.f32 %v2873_v23, %v2873_v23  ;;  %v1128_v35 = vadd.f32 %v1127_v61, %v2873_v23 }
 0x48b   :  { %v1165_v53 = vadd.f32 %v1164_v48, %v1150_v34 }
 0x490   :  { %v2887_v18 = vpop.f32.mrf.mxu0 }
 0x491   :  { %v1151_v52 = vmul.f32 %v2887_v18, %v2887_v18  ;;  %v1129_v39 = vadd.f32 %v1128_v35, %v2887_v18 }
 0x493   :  { %v1166_v54 = vadd.f32 %v1165_v53, %v1151_v52 }
 0x498   :  { %v2901_v32 = vpop.f32.mrf.mxu0 }
 0x499   :  { %v1152_v50 = vmul.f32 %v2901_v32, %v2901_v32  ;;  %v1130_v55 = vadd.f32 %v1129_v39, %v2901_v32 }
 0x49b   :  { %v1167_v46 = vadd.f32 %v1166_v54, %v1152_v50 }
 0x4a0   :  { %v1114_v56 = vpop.f32.mrf.mxu0 }
 0x4a1   :  { %v1131_v60 = vadd.f32 %v1130_v55, %v1114_v56  ;;  %v1153_v22 = vmul.f32 %v1114_v56, %v1114_v56 }
 0x4a3   :  { %v1132_v10 = vrot.slane %v1131_v60, 4  ;;  %v1168_v63 = vadd.f32 %v1167_v46, %v1153_v22 }
 0x4a5   :  { %v1133_v12 = vadd.f32 %v1132_v10, %v1131_v60  ;;  %v1169_v3 = vrot.slane %v1168_v63, 4 }
 0x4a7   :  { %v1134_v15 = vrot.slane %v1133_v12, 2  ;;  %v1170_v58 = vadd.f32 %v1169_v3, %v1168_v63 }
 0x4a9   :  { %v1135_v4 = vadd.f32 %v1134_v15, %v1133_v12  ;;  %v1171_v40 = vrot.slane %v1170_v58, 2 }
 0x4ab   :  { %v1136_v41 = vrot.slane %v1135_v4, 1  ;;  %v1172_v19 = vadd.f32 %v1171_v40, %v1170_v58 }
 0x4ad   :  { %v1137_v6 = vadd.f32 %v1136_v41, %v1135_v4  ;;  %v1173_v42 = vrot.slane %v1172_v19, 1 }
 0x4af   :  { %v1174_v43 = vadd.f32 %v1173_v42, %v1172_v19  ;;  %v1175_v7 = vmul.f32 0.125, %v1137_v6 }
 0x4b1   :  { %v1176_v13 = vmul.f32 0.125, %v1174_v43  ;;  %v1177_v14 = vmul.f32 %v1175_v7, %v1175_v7 }
 0x4b3   :  { %v1178_v51 = vsub.f32 %v1176_v13, %v1177_v14 }
 0x4b5   :  { %v1179_v37 = vmax.f32 %v1178_v51, 0.0 }
 0x4b7   :  { %v1180_v47 = vadd.f32 1e-05, %v1179_v37 }
 0x4b9   :  { %2207 = vrsqrt.f32 %v1180_v47  ;;  %vm1187_vm4 = vweird.f32 %v1180_v47 }
 0x4bf   :  { %v2208_v0 = vpop.eup %2207 }
 0x4c0   :  { %v1182_v25 = vmul.f32 %v2208_v0, %v1180_v47  ;;  %vm1188_vm3 = vweird.f32 %v2208_v0 }
 0x4c1   :  { %vm1189_vm5 = vmor %vm1187_vm4, %vm1188_vm3 }
 0x4c2   :  { %v1183_v26 = vmul.f32 %v2208_v0, %v1182_v25 }
 0x4c4   :  { %v1184_v20 = vmul.f32 0.5, %v1183_v26 }
 0x4c6   :  { %v1185_v29 = vsub.f32 1.5, %v1184_v20 }
 0x4c8   :  { %v1186_v5 = vmul.f32 %v2208_v0, %v1185_v29 }
 0x4ca   :  { %v1190_v44 = vsel %vm1189_vm5, %v2208_v0, %v1186_v5  ;;  %v2181_v0 = vld [vmem:[#allocation9 + $0x20] sm:$0xff]  ;;  %v2180_v5 = vld [vmem:[#allocation9 + $0x18] sm:$0xff] }
 0x4cb   :  { %v1191_v45 = vmul.f32 %v1190_v44, %v864_v57 }
 0x4cd   :  { %v1192_v2 = vmul.f32 %v1191_v45, %v1175_v7  ;;  %v1195_v61 = vperm.slane %v1191_v45, 0 }
 0x4cf   :  { %v1193_v34 = vsub.f32 %v865_v36, %v1192_v2  ;;  %v1212_v48 = vmul.f32 %v1195_v61, %v1114_v56  ;;  %v1197_v52 = vmul.f32 %v1195_v61, %v2838_v49  ;;  %v1198_v53 = vmul.f32 %v1195_v61, %v2840_v31  ;;  %v2182_v31 = vld [vmem:[#allocation9 + $0x28] sm:$0xff] }
 0x4d0   :  { %v1205_v60 = vmul.f32 %v1195_v61, %v2854_v11  ;;  %v1206_v22 = vmul.f32 %v1195_v61, %v2856_v1  ;;  %v1207_v10 = vmul.f32 %v1195_v61, %v2858_v38  ;;  %v1208_v56 = vmul.f32 %v1195_v61, %v2860_v33  ;;  %1466 = vmatpush.bf16.msrb.mxu2 %v2182_v31 }
 0x4d1   :  { %v1214_v35 = vperm.slane %v1193_v34, 0  ;;  %v1209_v49 = vmul.f32 %v1195_v61, %v2873_v23  ;;  %v1210_v41 = vmul.f32 %v1195_v61, %v2887_v18  ;;  %v1211_v1 = vmul.f32 %v1195_v61, %v2901_v32 }
 0x4d2   :  { %v1199_v23 = vmul.f32 %v1195_v61, %v2842_v27  ;;  %v1200_v13 = vmul.f32 %v1195_v61, %v2844_v8  ;;  %v1201_v25 = vmul.f32 %v1195_v61, %v2846_v59  ;;  %v1202_v26 = vmul.f32 %v1195_v61, %v2848_v28  ;;  %v2179_v59 = vld [vmem:[#allocation9 + $0x10] sm:$0xff]  ;;  %v2178_v28 = vld [vmem:[#allocation9 + $0x8] sm:$0xff] }
 0x4d3   :  { %v1231_v39 = vadd.f32 %v1214_v35, %v1212_v48  ;;  %v1216_v50 = vadd.f32 %v1214_v35, %v1197_v52  ;;  %v1217_v54 = vadd.f32 %v1214_v35, %v1198_v53  ;;  %v1224_v12 = vadd.f32 %v1214_v35, %v1205_v60  ;;  %v2177_v52 = vld [vmem:[#allocation9] sm:$0xff] }
 0x4d4   :  { %v1225_v3 = vadd.f32 %v1214_v35, %v1206_v22  ;;  %v1226_v15 = vadd.f32 %v1214_v35, %v1207_v10  ;;  %v1227_v40 = vadd.f32 %v1214_v35, %v1208_v56  ;;  %v1228_v19 = vadd.f32 %v1214_v35, %v1209_v49  ;;  %1467 = vmatpush.bf16.msrb.mxu2 %v2181_v0  ;;  %v2191_v10 = vld [vmem:[#allocation10 + $0x30] sm:$0xff] }
 0x4d5   :  { %v1232_v55 = vmax.f32 %v1216_v50, 0.0  ;;  %v1233_v46 = vmax.f32 %v1217_v54, 0.0  ;;  %v1240_v58 = vmax.f32 %v1224_v12, 0.0  ;;  %v1229_v42 = vadd.f32 %v1214_v35, %v1210_v41 }
 0x4d6   :  { %v1241_v4 = vmax.f32 %v1225_v3, 0.0  ;;  %v1242_v11 = vmax.f32 %v1226_v15, 0.0  ;;  %v1243_v6 = vmax.f32 %v1227_v40, 0.0  ;;  %v1247_v43 = vmax.f32 %v1231_v39, 0.0  ;;  %v2190_v40 = vld [vmem:[#allocation10 + $0x28] sm:$0xff] }
 0x4d7   :  { %v1248_v63 = vpack.c.bf16 %v1233_v46, %v1232_v55  ;;  %v1244_v33 = vmax.f32 %v1228_v19, 0.0  ;;  %v1230_v7 = vadd.f32 %v1214_v35, %v1211_v1  ;;  %v1245_v51 = vmax.f32 %v1229_v42, 0.0 }
 0x4d8   :  { %v1252_v38 = vpack.c.bf16 %v1241_v4, %v1240_v58  ;;  %v1253_v14 = vpack.c.bf16 %v1243_v6, %v1242_v11  ;;  %v1218_v17 = vadd.f32 %v1214_v35, %v1199_v23  ;;  %v1219_v18 = vadd.f32 %v1214_v35, %v1200_v13  ;;  %1468 = vmatpush.bf16.msrb.mxu2 %v2180_v5 }
 0x4d9   :  { %1315 = vmatmul.bf16.vlgmr.msrb.gmra.mxu1 %v1248_v63  ;;  %v1246_v37 = vmax.f32 %v1230_v7, 0.0  ;;  %v1254_v47 = vpack.c.bf16 %v1245_v51, %v1244_v33  ;;  %v1220_v27 = vadd.f32 %v1214_v35, %v1201_v25  ;;  %v1221_v20 = vadd.f32 %v1214_v35, %v1202_v26  ;;  %v2189_v7 = vld [vmem:[#allocation10 + $0x20] sm:$0xff] }
 0x4da   :  { %v1234_v24 = vmax.f32 %v1218_v17, 0.0  ;;  %v1235_v32 = vmax.f32 %v1219_v18, 0.0  ;;  %v1203_v30 = vmul.f32 %v1195_v61, %v2850_v9  ;;  %v1204_v44 = vmul.f32 %v1195_v61, %v2852_v62  ;;  %v2937_v9 = vld [vmem:[%s3229_s11] ss:$0 sm:$0xff]  ;;  %v2192_v62 = vld [vmem:[#allocation10 + $0x38] sm:$0xff] }
 0x4db   :  { %v1255_v21 = vpack.c.bf16 %v1247_v43, %v1246_v37  ;;  %v1236_v8 = vmax.f32 %v1220_v27, 0.0  ;;  %v1237_v29 = vmax.f32 %v1221_v20, 0.0  ;;  %1605 = vmatpush.bf16.msrb.mxu3 %v2192_v62 }
 0x4dc   :  { %v1249_v16 = vpack.c.bf16 %v1235_v32, %v1234_v24  ;;  %v1222_v45 = vadd.f32 %v1214_v35, %v1203_v30  ;;  %v1223_v36 = vadd.f32 %v1214_v35, %v1204_v44  ;;  %1469 = vmatpush.bf16.msrb.mxu2 %v2179_v59  ;;  %v2188_v24 = vld [vmem:[#allocation10 + $0x18] sm:$0xff]  ;;  %v2186_v59 = vld [vmem:[#allocation10 + $0x8] sm:$0xff] }
 0x4dd   :  { %v1250_v57 = vpack.c.bf16 %v1237_v29, %v1236_v8 }
 0x4de   :  { %v1238_v2 = vmax.f32 %v1222_v45, 0.0  ;;  %v1239_v34 = vmax.f32 %v1223_v36, 0.0 }
 0x4df   :  { %1606 = vmatpush.bf16.msrb.mxu3 %v2191_v10 }
 0x4e0   :  { %v1251_v48 = vpack.c.bf16 %v1239_v34, %v1238_v2  ;;  %1470 = vmatpush.bf16.msrb.mxu2 %v2178_v28  ;;  %v2185_v28 = vld [vmem:[#allocation10] sm:$0xff] }
 0x4e3   :  { %1607 = vmatpush.bf16.msrb.mxu3 %v2190_v40 }
 0x4e4   :  { %1471 = vmatpush.bf16.msrb.mxu2 %v2177_v52 }
 0x4e7   :  { %1608 = vmatpush.bf16.msrb.mxu3 %v2189_v7 }
 0x4e9   :  { %1320 = vmatmul.bf16.gmra.mxu1 %v1249_v16 }
 0x4eb   :  { %1609 = vmatpush.bf16.msrb.mxu3 %v2188_v24 }
 0x4f9   :  { %1325 = vmatmul.bf16.gmra.mxu1 %v1250_v57  ;;  %v2187_v57 = vld [vmem:[#allocation10 + $0x10] sm:$0xff] }
 0x4fa   :  { %1610 = vmatpush.bf16.msrb.mxu3 %v2187_v57 }
 0x4fe   :  { %1611 = vmatpush.bf16.msrb.mxu3 %v2186_v59 }
 0x502   :  { %1612 = vmatpush.bf16.msrb.mxu3 %v2185_v28 }
 0x509   :  { %1330 = vmatmul.bf16.gmra.mxu1 %v1251_v48 }
 0x519   :  { %1335 = vmatmul.bf16.gmra.mxu1 %v1252_v38 }
 0x529   :  { %1340 = vmatmul.bf16.gmra.mxu1 %v1253_v14 }
 0x539   :  { %1345 = vmatmul.bf16.gmra.mxu1 %v1254_v47 }
 0x549   :  { %1350 = vmatmul.bf16.gmra.mxu1 %v1255_v21 }
 0x556   :  { %v1316_v53 = vpop.f32.mrf.mxu1 }
 0x557   :  { %v1317_v35 = vadd.f32 %v2937_v9, %v1316_v53 }
 0x559   :  { %v1356_v54 = vmax.f32 %v1317_v35, 0.0 }
 0x55e   :  { %v1318_v61 = vpop.f32.mrf.mxu1 }
 0x55f   :  { %v1319_v39 = vadd.f32 %v2937_v9, %v1318_v61 }
 0x561   :  { %v1357_v50 = vmax.f32 %v1319_v39, 0.0 }
 0x563   :  { %v1373_v55 = vmul.f32 0.0, %v1357_v50 }
 0x565   :  { %v1388_v46 = vpack.c.bf16 %v1373_v55, %v1356_v54 }
 0x566   :  { %v1321_v60 = vpop.f32.mrf.mxu1 }
 0x567   :  { %1472 = vmatmul.bf16.vlgmr.msrb.gmra.mxu2 %v1388_v46  ;;  %v1322_v22 = vadd.f32 %v2937_v9, %v1321_v60 }
 0x569   :  { %v1358_v12 = vmax.f32 %v1322_v22, 0.0 }
 0x56b   :  { %v1374_v15 = vmul.f32 0.0, %v1358_v12 }
 0x56e   :  { %v1323_v63 = vpop.f32.mrf.mxu1 }
 0x56f   :  { %v1324_v3 = vadd.f32 %v2937_v9, %v1323_v63 }
 0x571   :  { %v1359_v56 = vmax.f32 %v1324_v3, 0.0 }
 0x573   :  { %v1375_v49 = vmul.f32 0.0, %v1359_v56 }
 0x575   :  { %v1389_v31 = vpack.c.bf16 %v1375_v49, %v1374_v15  ;;  %v2203_v49 = vld [vmem:[%s3231_s13] ss:$0 sm:$0xff] }
 0x576   :  { %v1326_v58 = vpop.f32.mrf.mxu1 }
 0x577   :  { %1477 = vmatmul.bf16.gmra.mxu2 %v1389_v31  ;;  %v1327_v4 = vadd.f32 %v2937_v9, %v1326_v58 }
 0x579   :  { %v1360_v11 = vmax.f32 %v1327_v4, 0.0 }
 0x57b   :  { %v1376_v38 = vmul.f32 0.0, %v1360_v11 }
 0x57e   :  { %v1328_v41 = vpop.f32.mrf.mxu1 }
 0x57f   :  { %v1329_v19 = vadd.f32 %v2937_v9, %v1328_v41 }
 0x581   :  { %v1361_v1 = vmax.f32 %v1329_v19, 0.0 }
 0x583   :  { %v1377_v6 = vmul.f32 0.0, %v1361_v1 }
 0x585   :  { %v1390_v42 = vpack.c.bf16 %v1377_v6, %v1376_v38 }
 0x586   :  { %v1331_v43 = vpop.f32.mrf.mxu1 }
 0x587   :  { %1482 = vmatmul.bf16.gmra.mxu2 %v1390_v42  ;;  %v1332_v33 = vadd.f32 %v2937_v9, %v1331_v43 }
 0x589   :  { %v1362_v13 = vmax.f32 %v1332_v33, 0.0 }
 0x58b   :  { %v1378_v37 = vmul.f32 0.0, %v1362_v13 }
 0x58e   :  { %v1333_v23 = vpop.f32.mrf.mxu1 }
 0x58f   :  { %v1334_v14 = vadd.f32 %v2937_v9, %v1333_v23 }
 0x591   :  { %v1363_v51 = vmax.f32 %v1334_v14, 0.0 }
 0x593   :  { %v1379_v17 = vmul.f32 0.0, %v1363_v51 }
 0x595   :  { %v1391_v18 = vpack.c.bf16 %v1379_v17, %v1378_v37 }
 0x596   :  { %v1336_v47 = vpop.f32.mrf.mxu1 }
 0x597   :  { %1487 = vmatmul.bf16.gmra.mxu2 %v1391_v18  ;;  %v1337_v21 = vadd.f32 %v2937_v9, %v1336_v47 }
 0x599   :  { %v1364_v16 = vmax.f32 %v1337_v21, 0.0 }
 0x59b   :  { %v1380_v26 = vmul.f32 0.0, %v1364_v16 }
 0x59e   :  { %v1338_v32 = vpop.f32.mrf.mxu1 }
 0x59f   :  { %v1339_v0 = vadd.f32 %v2937_v9, %v1338_v32 }
 0x5a1   :  { %v1365_v25 = vmax.f32 %v1339_v0, 0.0 }
 0x5a3   :  { %v1381_v27 = vmul.f32 0.0, %v1365_v25 }
 0x5a5   :  { %v1392_v20 = vpack.c.bf16 %v1381_v27, %v1380_v26 }
 0x5a6   :  { %v1341_v8 = vpop.f32.mrf.mxu1 }
 0x5a7   :  { %1492 = vmatmul.bf16.gmra.mxu2 %v1392_v20  ;;  %v1342_v29 = vadd.f32 %v2937_v9, %v1341_v8 }
 0x5a9   :  { %v1366_v30 = vmax.f32 %v1342_v29, 0.0 }
 0x5ab   :  { %v1382_v36 = vmul.f32 0.0, %v1366_v30 }
 0x5ae   :  { %v1343_v5 = vpop.f32.mrf.mxu1 }
 0x5af   :  { %v1344_v44 = vadd.f32 %v2937_v9, %v1343_v5 }
 0x5b1   :  { %v1367_v45 = vmax.f32 %v1344_v44, 0.0 }
 0x5b3   :  { %v1383_v2 = vmul.f32 0.0, %v1367_v45 }
 0x5b5   :  { %v1393_v34 = vpack.c.bf16 %v1383_v2, %v1382_v36 }
 0x5b6   :  { %v1346_v48 = vpop.f32.mrf.mxu1 }
 0x5b7   :  { %1497 = vmatmul.bf16.gmra.mxu2 %v1393_v34  ;;  %v1347_v52 = vadd.f32 %v2937_v9, %v1346_v48 }
 0x5b9   :  { %v1368_v62 = vmax.f32 %v1347_v52, 0.0 }
 0x5bb   :  { %v1384_v39 = vmul.f32 0.0, %v1368_v62 }
 0x5be   :  { %v1348_v53 = vpop.f32.mrf.mxu1 }
 0x5bf   :  { %v1349_v61 = vadd.f32 %v2937_v9, %v1348_v53 }
 0x5c1   :  { %v1369_v35 = vmax.f32 %v1349_v61, 0.0 }
 0x5c3   :  { %v1385_v50 = vmul.f32 0.0, %v1369_v35 }
 0x5c5   :  { %v1394_v54 = vpack.c.bf16 %v1385_v50, %v1384_v39 }
 0x5c6   :  { %v1351_v55 = vpop.f32.mrf.mxu1 }
 0x5c7   :  { %1502 = vmatmul.bf16.gmra.mxu2 %v1394_v54  ;;  %v1352_v46 = vadd.f32 %v2937_v9, %v1351_v55 }
 0x5c9   :  { %v1370_v22 = vmax.f32 %v1352_v46, 0.0 }
 0x5cb   :  { %v1386_v12 = vmul.f32 0.0, %v1370_v22 }
 0x5ce   :  { %v1353_v60 = vpop.f32.mrf.mxu1 }
 0x5cf   :  { %v1354_v10 = vadd.f32 %v2937_v9, %v1353_v60  ;;  %v1654_v60 = vlaneseq }
 0x5d1   :  { %v1371_v63 = vmax.f32 %v1354_v10, 0.0  ;;  %v2958_v22 = vand.u32 127, %v1654_v60  ;;  %v2963_v10 = vld [vmem:[%s3233_s15] ss:$0 sm:$0xff] }
 0x5d3   :  { %v1387_v3 = vmul.f32 0.0, %v1371_v63  ;;  %vm1656_vm6 = vcmp.lt.s32.totalorder %v2958_v22, 4 }
 0x5d5   :  { %v1395_v56 = vpack.c.bf16 %v1387_v3, %v1386_v12 }
 0x5d7   :  { %1507 = vmatmul.bf16.gmra.mxu2 %v1395_v56 }
 0x5ea   :  { %v1473_v15 = vpop.f32.mrf.mxu2 }
 0x5eb   :  { %v1474_v31 = vadd.f32 %v2203_v49, %v1473_v15 }
 0x5ed   :  { %v1513_v40 = vmax.f32 %v1474_v31, 0.0 }
 0x5f2   :  { %v1475_v58 = vpop.f32.mrf.mxu2 }
 0x5f3   :  { %v1476_v4 = vadd.f32 %v2203_v49, %v1475_v58 }
 0x5f5   :  { %v1514_v41 = vmax.f32 %v1476_v4, 0.0 }
 0x5f7   :  { %v1529_v11 = vpack.c.bf16 %v1514_v41, %v1513_v40 }
 0x5f9   :  { %1613 = vmatmul.bf16.vlgmr.msrb.gmra.mxu3 %v1529_v11 }
 0x5fa   :  { %v1478_v19 = vpop.f32.mrf.mxu2 }
 0x5fb   :  { %v1479_v1 = vadd.f32 %v2203_v49, %v1478_v19 }
 0x5fd   :  { %v1515_v6 = vmax.f32 %v1479_v1, 0.0 }
 0x602   :  { %v1480_v9 = vpop.f32.mrf.mxu2 }
 0x603   :  { %v1481_v38 = vadd.f32 %v2203_v49, %v1480_v9 }
 0x605   :  { %v1516_v42 = vmax.f32 %v1481_v38, 0.0 }
 0x607   :  { %v1530_v43 = vpack.c.bf16 %v1516_v42, %v1515_v6 }
 0x609   :  { %1618 = vmatmul.bf16.gmra.mxu3 %v1530_v43 }
 0x60a   :  { %v1483_v33 = vpop.f32.mrf.mxu2 }
 0x60b   :  { %v1484_v7 = vadd.f32 %v2203_v49, %v1483_v33 }
 0x60d   :  { %v1517_v14 = vmax.f32 %v1484_v7, 0.0 }
 0x612   :  { %v1485_v23 = vpop.f32.mrf.mxu2 }
 0x613   :  { %v1486_v13 = vadd.f32 %v2203_v49, %v1485_v23 }
 0x615   :  { %v1518_v51 = vmax.f32 %v1486_v13, 0.0 }
 0x617   :  { %v1531_v37 = vpack.c.bf16 %v1518_v51, %v1517_v14 }
 0x619   :  { %1623 = vmatmul.bf16.gmra.mxu3 %v1531_v37 }
 0x61a   :  { %v1488_v17 = vpop.f32.mrf.mxu2 }
 0x61b   :  { %v1489_v18 = vadd.f32 %v2203_v49, %v1488_v17 }
 0x61d   :  { %v1519_v24 = vmax.f32 %v1489_v18, 0.0 }
 0x622   :  { %v1490_v47 = vpop.f32.mrf.mxu2 }
 0x623   :  { %v1491_v21 = vadd.f32 %v2203_v49, %v1490_v47 }
 0x625   :  { %v1520_v32 = vmax.f32 %v1491_v21, 0.0 }
 0x627   :  { %v1532_v16 = vpack.c.bf16 %v1520_v32, %v1519_v24 }
 0x629   :  { %1628 = vmatmul.bf16.gmra.mxu3 %v1532_v16 }
 0x62a   :  { %v1493_v0 = vpop.f32.mrf.mxu2 }
 0x62b   :  { %v1494_v25 = vadd.f32 %v2203_v49, %v1493_v0 }
 0x62d   :  { %v1521_v20 = vmax.f32 %v1494_v25, 0.0 }
 0x632   :  { %v1495_v26 = vpop.f32.mrf.mxu2 }
 0x633   :  { %v1496_v27 = vadd.f32 %v2203_v49, %v1495_v26 }
 0x635   :  { %v1522_v8 = vmax.f32 %v1496_v27, 0.0 }
 0x637   :  { %v1533_v29 = vpack.c.bf16 %v1522_v8, %v1521_v20 }
 0x639   :  { %1633 = vmatmul.bf16.gmra.mxu3 %v1533_v29 }
 0x63a   :  { %v1498_v57 = vpop.f32.mrf.mxu2 }
 0x63b   :  { %v1499_v5 = vadd.f32 %v2203_v49, %v1498_v57 }
 0x63d   :  { %v1523_v45 = vmax.f32 %v1499_v5, 0.0 }
 0x642   :  { %v1500_v30 = vpop.f32.mrf.mxu2 }
 0x643   :  { %v1501_v44 = vadd.f32 %v2203_v49, %v1500_v30 }
 0x645   :  { %v1524_v36 = vmax.f32 %v1501_v44, 0.0 }
 0x647   :  { %v1534_v2 = vpack.c.bf16 %v1524_v36, %v1523_v45 }
 0x649   :  { %1638 = vmatmul.bf16.gmra.mxu3 %v1534_v2 }
 0x64a   :  { %v1503_v34 = vpop.f32.mrf.mxu2 }
 0x64b   :  { %v1504_v48 = vadd.f32 %v2203_v49, %v1503_v34 }
 0x64d   :  { %v1525_v52 = vmax.f32 %v1504_v48, 0.0 }
 0x652   :  { %v1505_v59 = vpop.f32.mrf.mxu2 }
 0x653   :  { %v1506_v28 = vadd.f32 %v2203_v49, %v1505_v59 }
 0x655   :  { %v1526_v53 = vmax.f32 %v1506_v28, 0.0 }
 0x657   :  { %v1535_v62 = vpack.c.bf16 %v1526_v53, %v1525_v52 }
 0x659   :  { %1643 = vmatmul.bf16.gmra.mxu3 %v1535_v62 }
 0x65a   :  { %v1508_v61 = vpop.f32.mrf.mxu2 }
 0x65b   :  { %v1509_v35 = vadd.f32 %v2203_v49, %v1508_v61 }
 0x65d   :  { %v1527_v54 = vmax.f32 %v1509_v35, 0.0 }
 0x662   :  { %v1510_v39 = vpop.f32.mrf.mxu2 }
 0x663   :  { %v1511_v50 = vadd.f32 %v2203_v49, %v1510_v39 }
 0x665   :  { %v1528_v55 = vmax.f32 %v1511_v50, 0.0 }
 0x667   :  { %v1536_v46 = vpack.c.bf16 %v1528_v55, %v1527_v54 }
 0x669   :  { %1648 = vmatmul.bf16.gmra.mxu3 %v1536_v46 }
 0x67c   :  { %v1614_v63 = vpop.f32.mrf.mxu3 }
 0x67d   :  { %v1615_v12 = vadd.f32 %v2963_v10, %v1614_v63 }
 0x67f   :  { %v1657_v3 = vsel %vm1656_vm6, %v1615_v12, -1e+30 }
 0x680   :  { %1673 = vmax.xlane.f32.xlu0 %v1657_v3 }
 0x684   :  { %v1616_v56 = vpop.f32.mrf.mxu3 }
 0x685   :  { %v1617_v15 = vadd.f32 %v2963_v10, %v1616_v56 }
 0x687   :  { %v2972_v49 = vsel %vm1656_vm6, %v1617_v15, -1e+30 }
 0x688   :  { %1675 = vmax.xlane.f32.xlu0 %v2972_v49 }
 0x68c   :  { %v1619_v31 = vpop.f32.mrf.mxu3 }
 0x68d   :  { %v1620_v58 = vadd.f32 %v2963_v10, %v1619_v31 }
 0x68f   :  { %v2978_v4 = vsel %vm1656_vm6, %v1620_v58, -1e+30 }
 0x690   :  { %1677 = vmax.xlane.f32.xlu1 %v2978_v4 }
 0x694   :  { %v1621_v40 = vpop.f32.mrf.mxu3 }
 0x695   :  { %v1622_v41 = vadd.f32 %v2963_v10, %v1621_v40 }
 0x697   :  { %v2984_v11 = vsel %vm1656_vm6, %v1622_v41, -1e+30 }
 0x698   :  { %1679 = vmax.xlane.f32.xlu1 %v2984_v11 }
 0x69c   :  { %v1624_v19 = vpop.f32.mrf.mxu3 }
 0x69d   :  { %v1625_v1 = vadd.f32 %v2963_v10, %v1624_v19 }
 0x69f   :  { %v2990_v9 = vsel %vm1656_vm6, %v1625_v1, -1e+30 }
 0x6a0   :  { %1681 = vmax.xlane.f32.xlu2 %v2990_v9 }
 0x6a4   :  { %v1626_v38 = vpop.f32.mrf.mxu3 }
 0x6a5   :  { %v1627_v6 = vadd.f32 %v2963_v10, %v1626_v38 }
 0x6a7   :  { %v2996_v42 = vsel %vm1656_vm6, %v1627_v6, -1e+30 }
 0x6a8   :  { %1683 = vmax.xlane.f32.xlu2 %v2996_v42 }
 0x6ac   :  { %v1629_v43 = vpop.f32.mrf.mxu3 }
 0x6ad   :  { %v1630_v33 = vadd.f32 %v2963_v10, %v1629_v43 }
 0x6af   :  { %v3002_v7 = vsel %vm1656_vm6, %v1630_v33, -1e+30 }
 0x6b0   :  { %1685 = vmax.xlane.f32.xlu0 %v3002_v7 }
 0x6b4   :  { %v1631_v23 = vpop.f32.mrf.mxu3 }
 0x6b5   :  { %v1632_v13 = vadd.f32 %v2963_v10, %v1631_v23 }
 0x6b7   :  { %v3008_v14 = vsel %vm1656_vm6, %v1632_v13, -1e+30 }
 0x6b8   :  { %1687 = vmax.xlane.f32.xlu1 %v3008_v14 }
 0x6bc   :  { %v1634_v51 = vpop.f32.mrf.mxu3 }
 0x6bd   :  { %v1635_v37 = vadd.f32 %v2963_v10, %v1634_v51 }
 0x6bf   :  { %v3014_v17 = vsel %vm1656_vm6, %v1635_v37, -1e+30 }
 0x6c0   :  { %1689 = vmax.xlane.f32.xlu2 %v3014_v17 }
 0x6c4   :  { %v1636_v18 = vpop.f32.mrf.mxu3 }
 0x6c5   :  { %v1637_v47 = vadd.f32 %v2963_v10, %v1636_v18 }
 0x6c7   :  { %v3020_v21 = vsel %vm1656_vm6, %v1637_v47, -1e+30 }
 0x6c8   :  { %1691 = vmax.xlane.f32.xlu0 %v3020_v21 }
 0x6cc   :  { %v1639_v24 = vpop.f32.mrf.mxu3 }
 0x6cd   :  { %v1640_v32 = vadd.f32 %v2963_v10, %v1639_v24 }
 0x6cf   :  { %v3026_v16 = vsel %vm1656_vm6, %v1640_v32, -1e+30 }
 0x6d0   :  { %1693 = vmax.xlane.f32.xlu1 %v3026_v16 }
 0x6d4   :  { %v1641_v0 = vpop.f32.mrf.mxu3 }
 0x6d5   :  { %v1642_v25 = vadd.f32 %v2963_v10, %v1641_v0 }
 0x6d7   :  { %v3032_v26 = vsel %vm1656_vm6, %v1642_v25, -1e+30 }
 0x6d8   :  { %1695 = vmax.xlane.f32.xlu2 %v3032_v26 }
 0x6dc   :  { %v1644_v27 = vpop.f32.mrf.mxu3 }
 0x6dd   :  { %v1645_v20 = vadd.f32 %v2963_v10, %v1644_v27 }
 0x6df   :  { %v3038_v8 = vsel %vm1656_vm6, %v1645_v20, -1e+30 }
 0x6e0   :  { %1697 = vmax.xlane.f32.xlu0 %v3038_v8 }
 0x6e4   :  { %v1646_v29 = vpop.f32.mrf.mxu3 }
 0x6e5   :  { %v1647_v57 = vadd.f32 %v2963_v10, %v1646_v29 }
 0x6e7   :  { %v3044_v5 = vsel %vm1656_vm6, %v1647_v57, -1e+30 }
 0x6e8   :  { %1699 = vmax.xlane.f32.xlu1 %v3044_v5 }
 0x6ec   :  { %v1649_v30 = vpop.f32.mrf.mxu3 }
 0x6ed   :  { %v1650_v44 = vadd.f32 %v2963_v10, %v1649_v30 }
 0x6ef   :  { %v3050_v45 = vsel %vm1656_vm6, %v1650_v44, -1e+30 }
 0x6f0   :  { %1701 = vmax.xlane.f32.xlu2 %v3050_v45 }
 0x6f3   :  { %v1674_v36 = vpop.xlane.xlu0 %1673 }
 0x6f4   :  { %v3053_v2 = vsub.f32 %v1657_v3, %v1674_v36  ;;  %v1651_v34 = vpop.f32.mrf.mxu3 }
 0x6f5   :  { %v1652_v48 = vadd.f32 %v2963_v10, %v1651_v34 }
 0x6f6   :  { %v1721_v59 = vmul.f32 1.442695, %v3053_v2 }
 0x6f7   :  { %v3059_v28 = vsel %vm1656_vm6, %v1652_v48, -1e+30 }
 0x6f8   :  { %2209 = vpow2.f32 %v1721_v59  ;;  %1703 = vmax.xlane.f32.xlu0 %v3059_v28 }
 0x6fb   :  { %v1676_v52 = vpop.xlane.xlu0 %1675 }
 0x6fc   :  { %v3063_v53 = vsub.f32 %v2972_v49, %v1676_v52 }
 0x6fe   :  { %v2210_v62 = vpop.eup %2209  ;;  %v1723_v61 = vmul.f32 1.442695, %v3063_v53 }
 0x6ff   :  { %v1753_v35 = vsel %vm1656_vm6, %v2210_v62, 0.0 }
 0x700   :  { %2211 = vpow2.f32 %v1723_v61  ;;  %1769 = vadd.xlane.f32.xlu1 %v1753_v35 }
 0x703   :  { %v1678_v39 = vpop.xlane.xlu1 %1677 }
 0x704   :  { %v3069_v50 = vsub.f32 %v2978_v4, %v1678_v39 }
 0x706   :  { %v2212_v54 = vpop.eup %2211  ;;  %v1725_v55 = vmul.f32 1.442695, %v3069_v50 }
 0x707   :  { %v1754_v46 = vsel %vm1656_vm6, %v2212_v54, 0.0 }
 0x708   :  { %2213 = vpow2.f32 %v1725_v55  ;;  %1771 = vadd.xlane.f32.xlu2 %v1754_v46 }
 0x70b   :  { %v1680_v60 = vpop.xlane.xlu1 %1679 }
 0x70c   :  { %v3075_v10 = vsub.f32 %v2984_v11, %v1680_v60 }
 0x70e   :  { %v2214_v63 = vpop.eup %2213  ;;  %v1727_v12 = vmul.f32 1.442695, %v3075_v10 }
 0x70f   :  { %v1755_v3 = vsel %vm1656_vm6, %v2214_v63, 0.0 }
 0x710   :  { %2215 = vpow2.f32 %v1727_v12  ;;  %1773 = vadd.xlane.f32.xlu0 %v1755_v3 }
 0x713   :  { %v1682_v56 = vpop.xlane.xlu2 %1681 }
 0x714   :  { %v3081_v15 = vsub.f32 %v2990_v9, %v1682_v56 }
 0x716   :  { %v2216_v49 = vpop.eup %2215  ;;  %v1729_v31 = vmul.f32 1.442695, %v3081_v15 }
 0x717   :  { %v1756_v58 = vsel %vm1656_vm6, %v2216_v49, 0.0 }
 0x718   :  { %2217 = vpow2.f32 %v1729_v31  ;;  %1775 = vadd.xlane.f32.xlu1 %v1756_v58 }
 0x71b   :  { %v1684_v4 = vpop.xlane.xlu2 %1683 }
 0x71c   :  { %v3087_v40 = vsub.f32 %v2996_v42, %v1684_v4 }
 0x71e   :  { %v2218_v41 = vpop.eup %2217  ;;  %v1731_v11 = vmul.f32 1.442695, %v3087_v40 }
 0x71f   :  { %v1757_v19 = vsel %vm1656_vm6, %v2218_v41, 0.0 }
 0x720   :  { %2219 = vpow2.f32 %v1731_v11  ;;  %1777 = vadd.xlane.f32.xlu2 %v1757_v19 }
 0x723   :  { %v1686_v1 = vpop.xlane.xlu0 %1685 }
 0x724   :  { %v3093_v9 = vsub.f32 %v3002_v7, %v1686_v1 }
 0x726   :  { %v2220_v38 = vpop.eup %2219  ;;  %v1733_v6 = vmul.f32 1.442695, %v3093_v9 }
 0x727   :  { %v1758_v43 = vsel %vm1656_vm6, %v2220_v38, 0.0 }
 0x728   :  { %2221 = vpow2.f32 %v1733_v6  ;;  %1779 = vadd.xlane.f32.xlu0 %v1758_v43 }
 0x72b   :  { %v1688_v42 = vpop.xlane.xlu1 %1687 }
 0x72c   :  { %v3099_v33 = vsub.f32 %v3008_v14, %v1688_v42 }
 0x72e   :  { %v2222_v23 = vpop.eup %2221  ;;  %v1735_v13 = vmul.f32 1.442695, %v3099_v33 }
 0x72f   :  { %v1759_v51 = vsel %vm1656_vm6, %v2222_v23, 0.0 }
 0x730   :  { %2223 = vpow2.f32 %v1735_v13  ;;  %1781 = vadd.xlane.f32.xlu1 %v1759_v51 }
 0x733   :  { %v1690_v7 = vpop.xlane.xlu2 %1689 }
 0x734   :  { %v3105_v37 = vsub.f32 %v3014_v17, %v1690_v7 }
 0x736   :  { %v2224_v18 = vpop.eup %2223  ;;  %v1737_v47 = vmul.f32 1.442695, %v3105_v37 }
 0x737   :  { %v1760_v24 = vsel %vm1656_vm6, %v2224_v18, 0.0 }
 0x738   :  { %2225 = vpow2.f32 %v1737_v47  ;;  %1783 = vadd.xlane.f32.xlu2 %v1760_v24 }
 0x73b   :  { %v1692_v14 = vpop.xlane.xlu0 %1691 }
 0x73c   :  { %v3111_v32 = vsub.f32 %v3020_v21, %v1692_v14 }
 0x73e   :  { %v2226_v0 = vpop.eup %2225  ;;  %v1739_v25 = vmul.f32 1.442695, %v3111_v32 }
 0x73f   :  { %v1761_v27 = vsel %vm1656_vm6, %v2226_v0, 0.0 }
 0x740   :  { %2227 = vpow2.f32 %v1739_v25  ;;  %1785 = vadd.xlane.f32.xlu0 %v1761_v27 }
 0x743   :  { %v1694_v17 = vpop.xlane.xlu1 %1693 }
 0x744   :  { %v3117_v20 = vsub.f32 %v3026_v16, %v1694_v17 }
 0x746   :  { %v2228_v29 = vpop.eup %2227  ;;  %v1741_v57 = vmul.f32 1.442695, %v3117_v20 }
 0x747   :  { %v1762_v30 = vsel %vm1656_vm6, %v2228_v29, 0.0 }
 0x748   :  { %2229 = vpow2.f32 %v1741_v57  ;;  %1787 = vadd.xlane.f32.xlu1 %v1762_v30 }
 0x74b   :  { %v1696_v21 = vpop.xlane.xlu2 %1695 }
 0x74c   :  { %v3123_v44 = vsub.f32 %v3032_v26, %v1696_v21 }
 0x74e   :  { %v2230_v36 = vpop.eup %2229  ;;  %v1743_v34 = vmul.f32 1.442695, %v3123_v44 }
 0x74f   :  { %v1763_v48 = vsel %vm1656_vm6, %v2230_v36, 0.0 }
 0x750   :  { %2231 = vpow2.f32 %v1743_v34  ;;  %1789 = vadd.xlane.f32.xlu2 %v1763_v48 }
 0x753   :  { %v1698_v16 = vpop.xlane.xlu0 %1697 }
 0x754   :  { %v3129_v59 = vsub.f32 %v3038_v8, %v1698_v16 }
 0x756   :  { %v2232_v52 = vpop.eup %2231  ;;  %v1745_v62 = vmul.f32 1.442695, %v3129_v59 }
 0x757   :  { %v1764_v61 = vsel %vm1656_vm6, %v2232_v52, 0.0 }
 0x758   :  { %2233 = vpow2.f32 %v1745_v62  ;;  %1791 = vadd.xlane.f32.xlu0 %v1764_v61 }
 0x75b   :  { %v1700_v26 = vpop.xlane.xlu1 %1699 }
 0x75c   :  { %v3135_v35 = vsub.f32 %v3044_v5, %v1700_v26 }
 0x75e   :  { %v2234_v39 = vpop.eup %2233  ;;  %v1747_v54 = vmul.f32 1.442695, %v3135_v35 }
 0x75f   :  { %v1765_v55 = vsel %vm1656_vm6, %v2234_v39, 0.0 }
 0x760   :  { %2235 = vpow2.f32 %v1747_v54  ;;  %1793 = vadd.xlane.f32.xlu1 %v1765_v55 }
 0x763   :  { %v1702_v8 = vpop.xlane.xlu2 %1701 }
 0x764   :  { %v3141_v46 = vsub.f32 %v3050_v45, %v1702_v8 }
 0x766   :  { %v2236_v60 = vpop.eup %2235  ;;  %v1749_v63 = vmul.f32 1.442695, %v3141_v46 }
 0x767   :  { %v1766_v12 = vsel %vm1656_vm6, %v2236_v60, 0.0 }
 0x768   :  { %2237 = vpow2.f32 %v1749_v63  ;;  %1795 = vadd.xlane.f32.xlu2 %v1766_v12 }
 0x76b   :  { %v1704_v5 = vpop.xlane.xlu0 %1703 }
 0x76c   :  { %v3147_v3 = vsub.f32 %v3059_v28, %v1704_v5 }
 0x76e   :  { %v2238_v56 = vpop.eup %2237  ;;  %v1751_v49 = vmul.f32 1.442695, %v3147_v3 }
 0x76f   :  { %v1767_v31 = vsel %vm1656_vm6, %v2238_v56, 0.0 }
 0x770   :  { %2239 = vpow2.f32 %v1751_v49  ;;  %1797 = vadd.xlane.f32.xlu0 %v1767_v31 }
 0x773   :  { %v1770_v45 = vpop.xlane.xlu1 %1769 }
 0x774   :  { %2241 = vlog2.f32 %v1770_v45 }
 0x776   :  { %v2240_v58 = vpop.eup %2239 }
 0x777   :  { %v1768_v4 = vsel %vm1656_vm6, %v2240_v58, 0.0 }
 0x778   :  { %1799 = vadd.xlane.f32.xlu1 %v1768_v4 }
 0x77a   :  { %v2242_v41 = vpop.eup %2241 }
 0x77b   :  { %v1802_v11 = vmul.f32 0.6931472, %v2242_v41  ;;  %v1772_v19 = vpop.xlane.xlu2 %1771 }
 0x77c   :  { %2243 = vlog2.f32 %v1772_v19 }
 0x77d   :  { %v1833_v28 = vsub.f32 %v3053_v2, %v1802_v11 }
 0x77f   :  { %1849 = vst [vmem:[%s3234_s16] sm:$0xff] %v1833_v28 }
 0x782   :  { %v2244_v1 = vpop.eup %2243 }
 0x783   :  { %v1804_v38 = vmul.f32 0.6931472, %v2244_v1  ;;  %v1774_v6 = vpop.xlane.xlu0 %1773 }
 0x784   :  { %2245 = vlog2.f32 %v1774_v6 }
 0x785   :  { %v1834_v43 = vsub.f32 %v3063_v53, %v1804_v38 }
 0x787   :  { %1850 = vst [vmem:[%s3234_s16 + $0x8] sm:$0xff] %v1834_v43 }
 0x78a   :  { %v2246_v22 = vpop.eup %2245 }
 0x78b   :  { %v1806_v42 = vmul.f32 0.6931472, %v2246_v22  ;;  %v1776_v23 = vpop.xlane.xlu1 %1775 }
 0x78c   :  { %2247 = vlog2.f32 %v1776_v23 }
 0x78d   :  { %v1835_v2 = vsub.f32 %v3069_v50, %v1806_v42 }
 0x78f   :  { %1851 = vst [vmem:[%s3234_s16 + $0x10] sm:$0xff] %v1835_v2 }
 0x792   :  { %v2248_v13 = vpop.eup %2247 }
 0x793   :  { %v1808_v51 = vmul.f32 0.6931472, %v2248_v13  ;;  %v1778_v7 = vpop.xlane.xlu2 %1777 }
 0x794   :  { %2249 = vlog2.f32 %v1778_v7 }
 0x795   :  { %v1836_v53 = vsub.f32 %v3075_v10, %v1808_v51 }
 0x797   :  { %1852 = vst [vmem:[%s3234_s16 + $0x18] sm:$0xff] %v1836_v53 }
 0x79a   :  { %v2250_v18 = vpop.eup %2249 }
 0x79b   :  { %v1810_v47 = vmul.f32 0.6931472, %v2250_v18  ;;  %v1780_v24 = vpop.xlane.xlu0 %1779 }
 0x79c   :  { %2251 = vlog2.f32 %v1780_v24 }
 0x79d   :  { %v1837_v50 = vsub.f32 %v3081_v15, %v1810_v47 }
 0x79f   :  { %1853 = vst [vmem:[%s3234_s16 + $0x20] sm:$0xff] %v1837_v50 }
 0x7a2   :  { %v2252_v14 = vpop.eup %2251 }
 0x7a3   :  { %v1812_v0 = vmul.f32 0.6931472, %v2252_v14  ;;  %v1782_v25 = vpop.xlane.xlu1 %1781 }
 0x7a4   :  { %2253 = vlog2.f32 %v1782_v25 }
 0x7a5   :  { %v1838_v10 = vsub.f32 %v3087_v40, %v1812_v0 }
 0x7a7   :  { %1854 = vst [vmem:[%s3234_s16 + $0x28] sm:$0xff] %v1838_v10 }
 0x7aa   :  { %v2254_v27 = vpop.eup %2253 }
 0x7ab   :  { %v1814_v17 = vmul.f32 0.6931472, %v2254_v27  ;;  %v1784_v29 = vpop.xlane.xlu2 %1783 }
 0x7ac   :  { %2255 = vlog2.f32 %v1784_v29 }
 0x7ad   :  { %v1839_v15 = vsub.f32 %v3093_v9, %v1814_v17 }
 0x7af   :  { %1855 = vst [vmem:[%s3234_s16 + $0x30] sm:$0xff] %v1839_v15 }
 0x7b2   :  { %v2256_v57 = vpop.eup %2255 }
 0x7b3   :  { %v1816_v30 = vmul.f32 0.6931472, %v2256_v57  ;;  %v1786_v21 = vpop.xlane.xlu0 %1785 }
 0x7b4   :  { %2257 = vlog2.f32 %v1786_v21 }
 0x7b5   :  { %v1840_v40 = vsub.f32 %v3099_v33, %v1816_v30 }
 0x7b7   :  { %1856 = vst [vmem:[%s3234_s16 + $0x38] sm:$0xff] %v1840_v40 }
 0x7ba   :  { %v2258_v36 = vpop.eup %2257 }
 0x7bb   :  { %v1818_v34 = vmul.f32 0.6931472, %v2258_v36  ;;  %v1788_v48 = vpop.xlane.xlu1 %1787 }
 0x7bc   :  { %2259 = vlog2.f32 %v1788_v48 }
 0x7bd   :  { %v1841_v9 = vsub.f32 %v3105_v37, %v1818_v34 }
 0x7bf   :  { %1857 = vst [vmem:[%s3234_s16 + $0x40] sm:$0xff] %v1841_v9 }
 0x7c2   :  { %v2260_v16 = vpop.eup %2259 }
 0x7c3   :  { %v1820_v52 = vmul.f32 0.6931472, %v2260_v16  ;;  %v1790_v62 = vpop.xlane.xlu2 %1789 }
 0x7c4   :  { %2261 = vlog2.f32 %v1790_v62 }
 0x7c5   :  { %v1842_v33 = vsub.f32 %v3111_v32, %v1820_v52 }
 0x7c7   :  { %1858 = vst [vmem:[%s3234_s16 + $0x48] sm:$0xff] %v1842_v33 }
 0x7ca   :  { %v2262_v61 = vpop.eup %2261 }
 0x7cb   :  { %v1822_v26 = vmul.f32 0.6931472, %v2262_v61  ;;  %v1792_v39 = vpop.xlane.xlu0 %1791 }
 0x7cc   :  { %2263 = vlog2.f32 %v1792_v39 }
 0x7cd   :  { %v1843_v37 = vsub.f32 %v3117_v20, %v1822_v26 }
 0x7cf   :  { %1859 = vst [vmem:[%s3234_s16 + $0x50] sm:$0xff] %v1843_v37 }
 0x7d2   :  { %v2264_v54 = vpop.eup %2263 }
 0x7d3   :  { %v1824_v55 = vmul.f32 0.6931472, %v2264_v54  ;;  %v1794_v8 = vpop.xlane.xlu1 %1793 }
 0x7d4   :  { %2265 = vlog2.f32 %v1794_v8 }
 0x7d5   :  { %v1844_v32 = vsub.f32 %v3123_v44, %v1824_v55 }
 0x7d7   :  { %1860 = vst [vmem:[%s3234_s16 + $0x58] sm:$0xff] %v1844_v32 }
 0x7da   :  { %v2266_v60 = vpop.eup %2265 }
 0x7db   :  { %v1826_v63 = vmul.f32 0.6931472, %v2266_v60  ;;  %v1796_v12 = vpop.xlane.xlu2 %1795 }
 0x7dc   :  { %2267 = vlog2.f32 %v1796_v12 }
 0x7dd   :  { %v1845_v20 = vsub.f32 %v3129_v59, %v1826_v63 }
 0x7df   :  { %1861 = vst [vmem:[%s3234_s16 + $0x60] sm:$0xff] %v1845_v20 }
 0x7e2   :  { %v2268_v5 = vpop.eup %2267 }
 0x7e3   :  { %v1828_v56 = vmul.f32 0.6931472, %v2268_v5  ;;  %v1798_v49 = vpop.xlane.xlu0 %1797 }
 0x7e4   :  { %2269 = vlog2.f32 %v1798_v49 }
 0x7e5   :  { %v1846_v44 = vsub.f32 %v3135_v35, %v1828_v56 }
 0x7e7   :  { %1862 = vst [vmem:[%s3234_s16 + $0x68] sm:$0xff] %v1846_v44 }
 0x7ea   :  { %v2270_v31 = vpop.eup %2269 }
 0x7eb   :  { %v1830_v45 = vmul.f32 0.6931472, %v2270_v31  ;;  %v1800_v58 = vpop.xlane.xlu1 %1799 }
 0x7ec   :  { %2271 = vlog2.f32 %v1800_v58 }
 0x7ed   :  { %v1847_v59 = vsub.f32 %v3141_v46, %v1830_v45 }
 0x7ef   :  { %1863 = vst [vmem:[%s3234_s16 + $0x70] sm:$0xff] %v1847_v59 }
 0x7f2   :  { %v2272_v4 = vpop.eup %2271 }
 0x7f3   :  { %v1832_v41 = vmul.f32 0.6931472, %v2272_v4 }
 0x7f5   :  { %v1848_v11 = vsub.f32 %v3147_v3, %v1832_v41 }
 0x7f7   :  { %1864 = vst [vmem:[%s3234_s16 + $0x78] sm:$0xff] %v1848_v11 }
 0x7f8   :  { %1869 = vsyncpa [#allocation3], 1 }
 0x7f9   :  { %1870 = vsyncpa [#allocation5], 1 }
 0x7fa   :  { %1871 = vsyncpa [#allocation8], 1 }
 0x7fb   :  { %1872 = vsyncpa [#allocation11], 1 }

</bundles_post_ra>
